<compile_context>
chip_gen: v7x
topology: tpu7x:2x2x1
jax: 0.10.0
libtpu: 0.0.40
codegen_flags: <defaults>
</compile_context>

<pallas_src>
import functools

import jax
import jax.numpy as jnp
from jax.experimental import pallas as pl
from jax.experimental.pallas import tpu as pltpu


# --------------------------------------------------------------------------- kernels
def _linear_relu_kernel(x_ref, w_ref, shift_ref, o_ref):
    """o = relu(x @ w + shift).  BN scale is pre-folded into w's columns."""
    acc = jnp.dot(x_ref[...], w_ref[...], preferred_element_type=jnp.float32)
    o_ref[...] = jnp.maximum(acc + shift_ref[...], 0.0).astype(o_ref.dtype)


def _deconv_stack_kernel(x_ref, w1_ref, s1_ref, w2_ref, s2_ref, w3_ref, s3_ref, o_ref):
    """Fused block1 -> block2 -> deconv_out -> tanh; intermediates never leave VMEM.

    Rows are (batch, base 4x4 pixel).  Lanes carry the nested
    (kh1,kw1[,kh2,kw2[,kh3,kw3]], channel) block order; w2/w3 are block-diagonal so
    no in-kernel reshape is required between the three MXU GEMMs.
    """
    y = jnp.dot(x_ref[...], w1_ref[...], preferred_element_type=jnp.float32)
    y = jnp.maximum(y + s1_ref[...], 0.0).astype(jnp.bfloat16)
    y = jnp.dot(y, w2_ref[...], preferred_element_type=jnp.float32)
    y = jnp.maximum(y + s2_ref[...], 0.0).astype(jnp.bfloat16)
    y = jnp.dot(y, w3_ref[...], preferred_element_type=jnp.float32)
    o_ref[...] = jnp.tanh(y + s3_ref[...]).astype(o_ref.dtype)


# -------------------------------------------------------------------------- wrappers
_VMEM_LIMIT = 32 * 1024 * 1024   # explicit; safe on v5e/v6e (128 MiB) and v7x (64 MiB)


def _pick_row_tile(n, candidates=(512, 256, 128, 64, 32, 16, 8)):
    # Largest tile that divides n exactly: no jnp.pad HBM copy, no masked tail tile.
    # 512 keeps the two v7x TensorCores load-balanced; with bf16 outputs 1024 would
    # also fit on v5e/v6e, 512 is the portable default.
    for c in candidates:
        if n % c == 0:
            return c
    return n          # single full-array block (always a legal block shape)


def _linear_relu(x, w, shift):
    """bf16 GEMM + shift + ReLU with bf16 output.  x:(N,K)  w:(K,M)  shift:(1,M)."""
    N, K = x.shape
    M = w.shape[1]
    rt = _pick_row_tile(N)
    # Column tiling gives the (often single-row-tile) preprocess GEMM a second
    # "parallel" grid axis so both v7x TensorCores get work.
    ct = 1024 if (M > 1024 and M % 1024 == 0) else M
    grid = (N // rt, M // ct)
    return pl.pallas_call(
        _linear_relu_kernel,
        out_shape=jax.ShapeDtypeStruct((N, M), jnp.bfloat16),
        grid_spec=pltpu.PrefetchScalarGridSpec(
            num_scalar_prefetch=0,
            grid=grid,
            in_specs=[
                pl.BlockSpec((rt, K), lambda i, j: (i, 0)),   # activations row tile
                pl.BlockSpec((K, ct), lambda i, j: (0, j)),   # weight column tile
                pl.BlockSpec((1, ct), lambda i, j: (0, j)),   # folded BN shift + bias
            ],
            out_specs=pl.BlockSpec((rt, ct), lambda i, j: (i, j)),
        ),
        compiler_params=pltpu.CompilerParams(
            dimension_semantics=("parallel", "parallel"),
            vmem_limit_bytes=_VMEM_LIMIT),
    )(x.astype(jnp.bfloat16), w, shift)


def _deconv_stack(x, w1, s1, w2, s2, w3, s3):
    """Fused block1+block2+deconv_out+tanh.  x:(N, 4h) bf16 -> (N, 64C) f32."""
    N, K = x.shape
    M = w3.shape[1]
    rt = _pick_row_tile(N)
    grid = (N // rt,)

    def const(shape):
        return pl.BlockSpec(shape, lambda i: (0, 0))          # resident constant block

    return pl.pallas_call(
        _deconv_stack_kernel,
        out_shape=jax.ShapeDtypeStruct((N, M), jnp.float32),
        grid_spec=pltpu.PrefetchScalarGridSpec(
            num_scalar_prefetch=0,
            grid=grid,
            in_specs=[
                pl.BlockSpec((rt, K), lambda i: (i, 0)),      # row tile of activations
                const(tuple(w1.shape)), const((1, w1.shape[1])),
                const(tuple(w2.shape)), const((1, w2.shape[1])),
                const(tuple(w3.shape)), const((1, w3.shape[1])),
            ],
            out_specs=pl.BlockSpec((rt, M), lambda i: (i, 0)),
        ),
        compiler_params=pltpu.CompilerParams(
            dimension_semantics=("parallel",),
            vmem_limit_bytes=_VMEM_LIMIT),
    )(x, w1, s1, w2, s2, w3, s3)


# --------------------------------------------------------------------------- forward
def wgan_generator_forward(z, params, *, hidden_dim, image_channels):
    """z: (B, input_dim) f32 -> images (B, image_channels, 32, 32) f32."""
    B = z.shape[0]
    h = hidden_dim
    C = image_channels

    # preprocess: Linear + BN1d + ReLU.  Columns are pixel-major, output is bf16.
    y = _linear_relu(z, params["pre_w"], params["pre_shift"])          # (B, 64h) bf16
    # Free row-major reshape: rows become (batch, base 4x4 pixel), lanes = 4h channels.
    x = y.reshape(B * 16, 4 * h)

    # Fused block1 + block2 + deconv_out + tanh.
    out = _deconv_stack(x,
                        params["b1_w"], params["b1_shift"],
                        params["b2_w"], params["b2_shift"],
                        params["out_w"], params["out_shift"])          # (B*16, 64C) f32

    # One combined permutation: undo the nested 2x2 block order AND go NHWC->NCHW.
    # axes: (b, i1, j1, kh1, kw1, kh2, kw2, kh3, kw3, c)
    y = out.reshape(B, 4, 4, 2, 2, 2, 2, 2, 2, C)
    img = y.transpose(0, 9, 1, 3, 5, 7, 2, 4, 6, 8).reshape(B, C, 32, 32)
    return img


# ---------------------------------------------------------------------------- params
def init_raw_params(key, input_dim, image_channels, hidden_dim):
    """Deterministic raw parameters mimicking the PyTorch module's layers."""
    h = hidden_dim
    ks = iter(jax.random.split(key, 24))

    def linear(fan_in, fan_out):
        bound = 1.0 / jnp.sqrt(jnp.float32(fan_in))
        w = jax.random.uniform(next(ks), (fan_in, fan_out), jnp.float32, -bound, bound)
        b = jax.random.uniform(next(ks), (fan_out,), jnp.float32, -bound, bound)
        return w, b

    def bn(c):
        gamma = jax.random.uniform(next(ks), (c,), jnp.float32, 0.5, 1.5)
        beta = jax.random.uniform(next(ks), (c,), jnp.float32, -0.5, 0.5)
        mean = jax.random.uniform(next(ks), (c,), jnp.float32, -0.5, 0.5)
        var = jax.random.uniform(next(ks), (c,), jnp.float32, 0.5, 1.5)
        return (gamma, beta, mean, var)

    def deconv(cin, cout):
        bound = 1.0 / jnp.sqrt(jnp.float32(cin * 4))
        w = jax.random.uniform(next(ks), (cin, cout, 2, 2), jnp.float32, -bound, bound)
        b = jax.random.uniform(next(ks), (cout,), jnp.float32, -bound, bound)
        return w, b

    raw = {}
    raw["pre_w"], raw["pre_b"] = linear(input_dim, 4 * 4 * 4 * h)
    raw["pre_bn"] = bn(4 * 4 * 4 * h)
    raw["b1_w4d"], raw["b1_b"] = deconv(4 * h, 2 * h)
    raw["b1_bn"] = bn(2 * h)
    raw["b2_w4d"], raw["b2_b"] = deconv(2 * h, h)
    raw["b2_bn"] = bn(h)
    raw["out_w4d"], raw["out_b"] = deconv(h, image_channels)
    return raw


def fold_params(raw, *, hidden_dim, eps=1e-5):
    """Fold BN (running stats) scale into bf16 weight columns and bias+shift into a
    per-column f32 shift; build pixel-major / block-diagonal GEMM weights."""
    h = hidden_dim

    def bn_fold(gamma, beta, mean, var):
        s = gamma / jnp.sqrt(var + eps)
        return s, beta - s * mean

    def stack(w4d):
        # (cin, cout, 2, 2) -> (cin, 4*cout), columns in (kh, kw, cout) order.
        cin, cout = w4d.shape[0], w4d.shape[1]
        return jnp.transpose(w4d, (0, 2, 3, 1)).reshape(cin, 4 * cout)

    def block_diag(w, n):
        # n identical diagonal blocks of w: (k, m) -> (n*k, n*m).
        k, m = w.shape
        eye = jnp.eye(n, dtype=w.dtype)
        return (eye[:, None, :, None] * w[None, :, None, :]).reshape(n * k, n * m)

    p = {}

    # preprocess: fold BN scale into columns, permute columns to pixel-major (p, c1)
    # so the GEMM output reshapes for free into (B*16, 4h) rows.
    s, t = bn_fold(*raw["pre_bn"])
    w = raw["pre_w"] * s[None, :]
    shift = s * raw["pre_b"] + t
    in_dim = w.shape[0]
    w = w.reshape(in_dim, 4 * h, 16).transpose(0, 2, 1).reshape(in_dim, 64 * h)
    shift = shift.reshape(4 * h, 16).T.reshape(64 * h)
    p["pre_w"] = w.astype(jnp.bfloat16)
    p["pre_shift"] = shift.reshape(1, -1).astype(jnp.float32)

    # block1: dense (4h, 4*2h), columns (q1=kh1*2+kw1, c2).
    s, t = bn_fold(*raw["b1_bn"])
    w1 = stack(raw["b1_w4d"]) * jnp.tile(s, 4)[None, :]
    p["b1_w"] = w1.astype(jnp.bfloat16)
    p["b1_shift"] = jnp.tile(s * raw["b1_b"] + t, 4).reshape(1, -1).astype(jnp.float32)

    # block2: block-diagonal over q1 (4 blocks of (2h, 4h)), columns (q1, q2, c3).
    s, t = bn_fold(*raw["b2_bn"])
    w2 = stack(raw["b2_w4d"]) * jnp.tile(s, 4)[None, :]
    p["b2_w"] = block_diag(w2, 4).astype(jnp.bfloat16)
    p["b2_shift"] = jnp.tile(s * raw["b2_b"] + t, 16).reshape(1, -1).astype(jnp.float32)

    # deconv_out: block-diagonal over (q1, q2) (16 blocks of (h, 4C)),
    # columns (q1, q2, q3, c).  No BN; bias only.
    w3 = stack(raw["out_w4d"])
    p["out_w"] = block_diag(w3, 16).astype(jnp.bfloat16)
    p["out_shift"] = jnp.tile(raw["out_b"], 64).reshape(1, -1).astype(jnp.float32)
    return p


# ------------------------------------------------------------------------- reference
def reference_forward(z, raw, *, hidden_dim, image_channels, eps=1e-5):
    """Pure-JAX f32 reference with the module's original op order (NCHW)."""
    h = hidden_dim
    B = z.shape[0]
    hp = jax.lax.Precision.HIGHEST

    def bn1d(x, gamma, beta, mean, var):
        return gamma * (x - mean) / jnp.sqrt(var + eps) + beta

    def bn2d(x, gamma, beta, mean, var):
        g = gamma[None, :, None, None]; b = beta[None, :, None, None]
        m = mean[None, :, None, None]; v = var[None, :, None, None]
        return g * (x - m) / jnp.sqrt(v + eps) + b

    y = jnp.dot(z, raw["pre_w"], precision=hp) + raw["pre_b"]
    y = jnp.maximum(bn1d(y, *raw["pre_bn"]), 0.0)
    x = y.reshape(B, 4 * h, 4, 4)                                  # NCHW

    def deconv(x_nchw, w4d, bias):
        # ConvTranspose2d(k=2, s=2): out[:, :, 2i+kh, 2j+kw] = sum_ci x*W + b
        y = jnp.einsum("bchw,coyx->bohywx", x_nchw, w4d, precision=hp)
        Bn, Co, H, _, W, _ = y.shape
        return y.reshape(Bn, Co, 2 * H, 2 * W) + bias[None, :, None, None]

    x = jnp.maximum(bn2d(deconv(x, raw["b1_w4d"], raw["b1_b"]), *raw["b1_bn"]), 0.0)
    x = jnp.maximum(bn2d(deconv(x, raw["b2_w4d"], raw["b2_b"]), *raw["b2_bn"]), 0.0)
    x = jnp.tanh(deconv(x, raw["out_w4d"], raw["out_b"]))
    return x.reshape(-1, image_channels, 32, 32)


# ------------------------------------------------------------------------------ main
if __name__ == "__main__":
    key = jax.random.PRNGKey(0)
    k_z, k_p = jax.random.split(key)

    B, INPUT_DIM, CHANNELS, HIDDEN = 2, 64, 3, 32        # small test shapes
    z = jax.random.normal(k_z, (B, INPUT_DIM), jnp.float32)

    raw = init_raw_params(k_p, INPUT_DIM, CHANNELS, HIDDEN)
    params = fold_params(raw, hidden_dim=HIDDEN)

    fwd = jax.jit(functools.partial(wgan_generator_forward,
                                    hidden_dim=HIDDEN, image_channels=CHANNELS))
    out = jax.block_until_ready(fwd(z, params))

    ref = reference_forward(z, raw, hidden_dim=HIDDEN, image_channels=CHANNELS)

    assert out.shape == (B, CHANNELS, 32, 32), out.shape
    max_err = float(jnp.max(jnp.abs(out - ref)))
    # Kernels run bf16 MXU GEMMs with BN scale folded into the bf16 weights, so
    # expect ~1e-3-level deviation from the f32 reference.
    assert jnp.allclose(out, ref, atol=2e-2, rtol=2e-2), max_err

    print("KERNEL_OK")
</pallas_src>

<mosaic_0001>
module attributes {stable_mosaic.version = 11 : i64} {
  func.func @_linear_relu_kernel(%arg0: i32, %arg1: i32, %arg2: memref<2x64xbf16, #tpu.memory_space<vmem>>, %arg3: memref<64x1024xbf16, #tpu.memory_space<vmem>>, %arg4: memref<1x1024xf32, #tpu.memory_space<vmem>>, %arg5: memref<2x1024xbf16, #tpu.memory_space<vmem>>) attributes {dimension_semantics = [#tpu.dimension_semantics<parallel>, #tpu.dimension_semantics<parallel>], iteration_bounds = array<i64: 1, 2>, scalar_prefetch = 0 : i64, scratch_operands = 0 : i64, tpu.core_type = #tpu.core_type<tc>, window_params = [{transform_indices = @transform_0, window_bounds = array<i64: 2, 64>}, {transform_indices = @transform_1, window_bounds = array<i64: 64, 1024>}, {transform_indices = @transform_2, window_bounds = array<i64: 1, 1024>}, {transform_indices = @transform_3, window_bounds = array<i64: 2, 1024>}]} {
    %c0 = arith.constant 0 : index
    %c0_0 = arith.constant 0 : index
    %0 = vector.load %arg2[%c0, %c0_0] : memref<2x64xbf16, #tpu.memory_space<vmem>>, vector<2x64xbf16>
    %c0_1 = arith.constant 0 : index
    %c0_2 = arith.constant 0 : index
    %1 = vector.load %arg3[%c0_1, %c0_2] : memref<64x1024xbf16, #tpu.memory_space<vmem>>, vector<64x1024xbf16>
    %cst = arith.constant dense<0.000000e+00> : vector<2x1024xf32>
    %2 = tpu.matmul %0, %1, %cst {dimension_numbers = #tpu.dot_dimension_numbers<[1], [0], [0], [1], [0, 0, 1, 1], [], []>} : vector<2x64xbf16>, vector<64x1024xbf16>, vector<2x1024xf32> -> vector<2x1024xf32>
    %c0_3 = arith.constant 0 : index
    %c0_4 = arith.constant 0 : index
    %3 = vector.load %arg4[%c0_3, %c0_4] : memref<1x1024xf32, #tpu.memory_space<vmem>>, vector<1x1024xf32>
    %4 = vector.broadcast %3 : vector<1x1024xf32> to vector<2x1024xf32>
    %5 = arith.addf %2, %4 : vector<2x1024xf32>
    %cst_5 = arith.constant 0.000000e+00 : f32
    %6 = vector.broadcast %cst_5 : f32 to vector<2x1024xf32>
    %7 = arith.maximumf %5, %6 : vector<2x1024xf32>
    %8 = arith.truncf %7 : vector<2x1024xf32> to vector<2x1024xbf16>
    %c0_6 = arith.constant 0 : index
    %c0_7 = arith.constant 0 : index
    %9 = vector.load %arg5[%c0_6, %c0_7] : memref<2x1024xbf16, #tpu.memory_space<vmem>>, vector<2x1024xbf16>
    tpu.vector_store %arg5[%c0_6, %c0_7], %8 {strides = array<i32>} : memref<2x1024xbf16, #tpu.memory_space<vmem>>, vector<2x1024xbf16>,
    return
  }
  func.func @transform_0(%arg0: i32, %arg1: i32) -> (i32, i32) {
    %c0_i32 = arith.constant 0 : i32
    %c0_i32_0 = arith.constant 0 : i32
    return %arg0, %c0_i32 : i32, i32
  }
  func.func @transform_1(%arg0: i32, %arg1: i32) -> (i32, i32) {
    %c0_i32 = arith.constant 0 : i32
    %c0_i32_0 = arith.constant 0 : i32
    return %c0_i32, %arg1 : i32, i32
  }
  func.func @transform_2(%arg0: i32, %arg1: i32) -> (i32, i32) {
    %c0_i32 = arith.constant 0 : i32
    %c0_i32_0 = arith.constant 0 : i32
    return %c0_i32, %arg1 : i32, i32
  }
  func.func @transform_3(%arg0: i32, %arg1: i32) -> (i32, i32) {
    %c0_i32 = arith.constant 0 : i32
    return %arg0, %arg1 : i32, i32
  }
}

module attributes {stable_mosaic.version = 11 : i64} {
  func.func @_deconv_stack_kernel(%arg0: i32, %arg1: memref<32x128xbf16, #tpu.memory_space<vmem>>, %arg2: memref<128x256xbf16, #tpu.memory_space<vmem>>, %arg3: memref<1x256xf32, #tpu.memory_space<vmem>>, %arg4: memref<256x512xbf16, #tpu.memory_space<vmem>>, %arg5: memref<1x512xf32, #tpu.memory_space<vmem>>, %arg6: memref<512x192xbf16, #tpu.memory_space<vmem>>, %arg7: memref<1x192xf32, #tpu.memory_space<vmem>>, %arg8: memref<32x192xf32, #tpu.memory_space<vmem>>) attributes {dimension_semantics = [#tpu.dimension_semantics<parallel>], iteration_bounds = array<i64: 1>, scalar_prefetch = 0 : i64, scratch_operands = 0 : i64, tpu.core_type = #tpu.core_type<tc>, window_params = [{transform_indices = @transform_0, window_bounds = array<i64: 32, 128>}, {pipeline_mode = #tpu.pipeline_mode<synchronous>, transform_indices = @transform_1, window_bounds = array<i64: 128, 256>}, {pipeline_mode = #tpu.pipeline_mode<synchronous>, transform_indices = @transform_2, window_bounds = array<i64: 1, 256>}, {pipeline_mode = #tpu.pipeline_mode<synchronous>, transform_indices = @transform_3, window_bounds = array<i64: 256, 512>}, {pipeline_mode = #tpu.pipeline_mode<synchronous>, transform_indices = @transform_4, window_bounds = array<i64: 1, 512>}, {pipeline_mode = #tpu.pipeline_mode<synchronous>, transform_indices = @transform_5, window_bounds = array<i64: 512, 192>}, {pipeline_mode = #tpu.pipeline_mode<synchronous>, transform_indices = @transform_6, window_bounds = array<i64: 1, 192>}, {transform_indices = @transform_7, window_bounds = array<i64: 32, 192>}]} {
    %c0 = arith.constant 0 : index
    %c0_0 = arith.constant 0 : index
    %0 = vector.load %arg1[%c0, %c0_0] : memref<32x128xbf16, #tpu.memory_space<vmem>>, vector<32x128xbf16>
    %c0_1 = arith.constant 0 : index
    %c0_2 = arith.constant 0 : index
    %1 = vector.load %arg2[%c0_1, %c0_2] : memref<128x256xbf16, #tpu.memory_space<vmem>>, vector<128x256xbf16>
    %cst = arith.constant dense<0.000000e+00> : vector<32x256xf32>
    %2 = tpu.matmul %0, %1, %cst {dimension_numbers = #tpu.dot_dimension_numbers<[1], [0], [0], [1], [0, 0, 1, 1], [], []>} : vector<32x128xbf16>, vector<128x256xbf16>, vector<32x256xf32> -> vector<32x256xf32>
    %c0_3 = arith.constant 0 : index
    %c0_4 = arith.constant 0 : index
    %3 = vector.load %arg3[%c0_3, %c0_4] : memref<1x256xf32, #tpu.memory_space<vmem>>, vector<1x256xf32>
    %4 = vector.broadcast %3 : vector<1x256xf32> to vector<32x256xf32>
    %5 = arith.addf %2, %4 : vector<32x256xf32>
    %cst_5 = arith.constant 0.000000e+00 : f32
    %6 = vector.broadcast %cst_5 : f32 to vector<32x256xf32>
    %7 = arith.maximumf %5, %6 : vector<32x256xf32>
    %8 = arith.truncf %7 : vector<32x256xf32> to vector<32x256xbf16>
    %c0_6 = arith.constant 0 : index
    %c0_7 = arith.constant 0 : index
    %9 = vector.load %arg4[%c0_6, %c0_7] : memref<256x512xbf16, #tpu.memory_space<vmem>>, vector<256x512xbf16>
    %cst_8 = arith.constant dense<0.000000e+00> : vector<32x512xf32>
    %10 = tpu.matmul %8, %9, %cst_8 {dimension_numbers = #tpu.dot_dimension_numbers<[1], [0], [0], [1], [0, 0, 1, 1], [], []>} : vector<32x256xbf16>, vector<256x512xbf16>, vector<32x512xf32> -> vector<32x512xf32>
    %c0_9 = arith.constant 0 : index
    %c0_10 = arith.constant 0 : index
    %11 = vector.load %arg5[%c0_9, %c0_10] : memref<1x512xf32, #tpu.memory_space<vmem>>, vector<1x512xf32>
    %12 = vector.broadcast %11 : vector<1x512xf32> to vector<32x512xf32>
    %13 = arith.addf %10, %12 : vector<32x512xf32>
    %cst_11 = arith.constant 0.000000e+00 : f32
    %14 = vector.broadcast %cst_11 : f32 to vector<32x512xf32>
    %15 = arith.maximumf %13, %14 : vector<32x512xf32>
    %16 = arith.truncf %15 : vector<32x512xf32> to vector<32x512xbf16>
    %c0_12 = arith.constant 0 : index
    %c0_13 = arith.constant 0 : index
    %17 = vector.load %arg6[%c0_12, %c0_13] : memref<512x192xbf16, #tpu.memory_space<vmem>>, vector<512x192xbf16>
    %cst_14 = arith.constant dense<0.000000e+00> : vector<32x192xf32>
    %18 = tpu.matmul %16, %17, %cst_14 {dimension_numbers = #tpu.dot_dimension_numbers<[1], [0], [0], [1], [0, 0, 1, 1], [], []>} : vector<32x512xbf16>, vector<512x192xbf16>, vector<32x192xf32> -> vector<32x192xf32>
    %c0_15 = arith.constant 0 : index
    %c0_16 = arith.constant 0 : index
    %19 = vector.load %arg7[%c0_15, %c0_16] : memref<1x192xf32, #tpu.memory_space<vmem>>, vector<1x192xf32>
    %20 = vector.broadcast %19 : vector<1x192xf32> to vector<32x192xf32>
    %21 = arith.addf %18, %20 : vector<32x192xf32>
    %22 = math.tanh %21 : vector<32x192xf32>
    %c0_17 = arith.constant 0 : index
    %c0_18 = arith.constant 0 : index
    %23 = vector.load %arg8[%c0_17, %c0_18] : memref<32x192xf32, #tpu.memory_space<vmem>>, vector<32x192xf32>
    tpu.vector_store %arg8[%c0_17, %c0_18], %22 {strides = array<i32>} : memref<32x192xf32, #tpu.memory_space<vmem>>, vector<32x192xf32>,
    return
  }
  func.func @transform_0(%arg0: i32) -> (i32, i32) {
    %c0_i32 = arith.constant 0 : i32
    %c0_i32_0 = arith.constant 0 : i32
    return %arg0, %c0_i32 : i32, i32
  }
  func.func @transform_1(%arg0: i32) -> (i32, i32) {
    %c0_i32 = arith.constant 0 : i32
    %c0_i32_0 = arith.constant 0 : i32
    %c0_i32_1 = arith.constant 0 : i32
    return %c0_i32, %c0_i32_0 : i32, i32
  }
  func.func @transform_2(%arg0: i32) -> (i32, i32) {
    %c0_i32 = arith.constant 0 : i32
    %c0_i32_0 = arith.constant 0 : i32
    %c0_i32_1 = arith.constant 0 : i32
    return %c0_i32, %c0_i32_0 : i32, i32
  }
  func.func @transform_3(%arg0: i32) -> (i32, i32) {
    %c0_i32 = arith.constant 0 : i32
    %c0_i32_0 = arith.constant 0 : i32
    %c0_i32_1 = arith.constant 0 : i32
    return %c0_i32, %c0_i32_0 : i32, i32
  }
  func.func @transform_4(%arg0: i32) -> (i32, i32) {
    %c0_i32 = arith.constant 0 : i32
    %c0_i32_0 = arith.constant 0 : i32
    %c0_i32_1 = arith.constant 0 : i32
    return %c0_i32, %c0_i32_0 : i32, i32
  }
  func.func @transform_5(%arg0: i32) -> (i32, i32) {
    %c0_i32 = arith.constant 0 : i32
    %c0_i32_0 = arith.constant 0 : i32
    %c0_i32_1 = arith.constant 0 : i32
    return %c0_i32, %c0_i32_0 : i32, i32
  }
  func.func @transform_6(%arg0: i32) -> (i32, i32) {
    %c0_i32 = arith.constant 0 : i32
    %c0_i32_0 = arith.constant 0 : i32
    %c0_i32_1 = arith.constant 0 : i32
    return %c0_i32, %c0_i32_0 : i32, i32
  }
  func.func @transform_7(%arg0: i32) -> (i32, i32) {
    %c0_i32 = arith.constant 0 : i32
    %c0_i32_0 = arith.constant 0 : i32
    return %arg0, %c0_i32 : i32, i32
  }
}

</mosaic_0001>

<bundles_post_ra>
// kernel: wgan_generator_forward.2
= control target key start
LH: loop header
LB: loop body
LE: loop exit
PB: predicated region body
PF: predicated region fallthrough
CT: control target
= control target key end

     0   :  { %8 = vsyncpa [#allocation3], 0  ;;  %s1346_s0 = inlined_call_operand.vmem [shape: bf16[2,64], index: 0, kind: input, shape index: {}]   ;;  %s1347_s1 = inlined_call_operand.hbm [shape: bf16[64,2048], index: 1, kind: input, shape index: {}]   ;;  %s1348_s2 = inlined_call_operand.hbm [shape: f32[1,2048], index: 2, kind: input, shape index: {}]   ;;  %s1349_s3 = inlined_call_operand.vmem [shape: bf16[2,2048], index: 3, kind: output, shape index: {}]  }
   0x1   :  { %10 = vsyncpa [#allocation3 + $0x1], 0 }
   0x2   :  { %11 = vsyncpa [#allocation5], 0 }
   0x3   :  { %13 = vsyncpa [#allocation5 + $0x1], 0  ;;  %s1133_s12 = smov 0   ;;  %s1135_s13 = smov 0  }
   0x4   :  { %s1137_s14 = smov 0   ;;  %s1139_s15 = smov 0  }
   0x5   :  { %s1141_s16 = smov 0   ;;  %s1143_s17 = smov 0  }
   0x6 LB: > { %s866_s18 = sadd.s32 4294967295, %s1104_s17   ;;  %s28_s19 = sadd.s32 1, %s1100_s16  ;;  %s1104_s17 = sphi %s1143_s17, %s19_s17   ;;  %s1100_s16 = sphi %s1141_s16, %s1362_s16   ;;  %s1096_s15 = sphi %s1139_s15, %s1361_s15   ;;  %s1092_s14 = sphi %s1137_s14, %s1360_s14   ;;  %s1088_s13 = sphi %s1135_s13, %s1359_s13   ;;  %s1084_s12 = sphi %s1133_s12, %s1358_s12  }
   0x7   : > { %p29_p0 = scmp.ge.s32.totalorder %s28_s19, 2  ;;  %s64_s20 = sadd.s32 1, %s1092_s14 }
   0x8   : > { %p71_p1 = scmp.ne.s32.totalorder %s1092_s14, %s1088_s13  ;;  %p72_p2 = scmp.eq.s32.totalorder %s1104_s17, 0 }
   0x9   : > { %s1364_s19 = smov (%p29_p0, %s28_s19), 0  ;;  %p77_p4 = scmp.ne.s32.totalorder %s1088_s13, %s1084_s12 }
   0xa   : > { %p1169_p3 = por %p72_p2, %p71_p1  ;;  %s61_s22 = ssub.s32 %s1100_s16, %s1364_s19 }
   0xb   : > { %p78_p5 = scmp.eq.s32.totalorder %s866_s18, 0  ;;  %p62_p6 = scmp.eq.s32.totalorder %s61_s22, 0 }
   0xc   : > { %p936_p8 = scmp.lt.s32.totalorder %s1104_s17, 2  ;;  %s1185_s25 = sand.u32 1, %s1092_s14  }
   0xd   : > { %p1176_p7 = por %p78_p5, %p77_p4  ;;  %s923_s26 = sshll.u32 %s1100_s16, 9 }
   0xe   : > { %s1182_s24 = scalar_select %p62_p6, %s1092_s14, %s64_s20  }
   0xf   : > { %s1352_s23 = scalar_select %p1176_p7, 1, 0 }
  0x10   : > { %s871_s27 = sshll.u32 %s1185_s25, 8  ;;  %s1192_s30 = scalar_lea.hbm %s1347_s1, %s923_s26 }
  0x11   : > { %s165_s4 = scalar_lea.vmem [#allocation2], %s871_s27  ;;  %p1196_p9 = pnand %p936_p8, %p1169_p3 }
  0x12   : > { %s172_s5 = sshll.u32 %s165_s4, 4  ;;  %s162_s7 = scalar_lea.sflag [#allocation3], %s1185_s25  ;;  %s1200_s5 = int_to_ptr.vmem [resolvable:$true] %s172_s5 }
  0x13   : > { %s990_s8 = scalar_lea.hbm %s1192_s30, 4096  ;;  %p992_p12 = pneg %p1196_p9 }
  0x14   : > { %p991_p11 = scmp.ne.s32.totalorder %s1192_s30, %s990_s8  ;;  %s995_s11 = scalar_lea.hbm %s1347_s1, 8192 }
  0x15   : > { %p996_p1 = scmp.lt.u32.totalorder %s1192_s30, %s1347_s1  ;;  %p997_p2 = scmp.lt.u32.totalorder %s995_s11, %s990_s8 }
  0x16   : > { %p993_p13 = pnand %p992_p12, %p991_p11  ;;  %p999_p4 = scmp.lt.u32.totalorder %s990_s8, %s1192_s30 }
  0x17   : > { %p998_p3 = por %p997_p2, %p996_p1 }
  0x18   : > { %p994_p0 = pneg %p993_p13 }
  0x19   : > { %p1000_p5 = por %p999_p4, %p998_p3 }
  0x1b   : > { %p1001_p6 = pnand %p1000_p5, %p994_p0 }
  0x1d   : > { %1004 = shalt.err (!%p1001_p6)
}
  0x1e   : > { %s1005_s20 = scalar_lea.vmem %s1200_s5, 4096  ;;  %s1106_s21 = smov [#allocation2]  }
  0x1f   : > { %p1006_p8 = scmp.ne.s32.totalorder %s1200_s5, %s1005_s20  ;;  %s1010_s22 = sshll.u32 %s1106_s21, 4  ;;  %s1011_s22 = int_to_ptr.vmem [resolvable:$false] %s1010_s22 }
  0x20   : > { %s1012_s26 = scalar_lea.vmem %s1011_s22, 8192  ;;  %p1013_p10 = scmp.lt.s32.totalorder %s1200_s5, %s1011_s22 }
  0x21   : > { %p1008_p11 = pnand %p1006_p8, %p992_p12  ;;  %p1014_p1 = scmp.lt.s32.totalorder %s1012_s26, %s1005_s20 }
  0x23   : > { %p1009_p13 = pneg %p1008_p11  ;;  %p1015_p2 = por %p1014_p1, %p1013_p10 }
  0x25   : > { %p1016_p3 = pnand %p1015_p2, %p1009_p13 }
  0x27   : > { %1019 = shalt.err (!%p1016_p3)
}
  0x28   : > { %s1107_s27 = smov 1024   ;;  %s1108_s28 = smov 512  }
  0x29   : > { %s1109_s29 = smov 32   ;;  %p199_p0 = scmp.lt.s32.totalorder %s1104_s17, 3 }
  0x2a   : > { %932 = dma.hbm_to_vmem [thread:$0]  (!%p1196_p9), %s1192_s30, 4096, %s1200_s5, %s162_s7, %s1107_s27, %s1108_s28, %s1109_s29  }
  0x2b   : > { %s874_s4 = sshll.u32 %s1185_s25, 3  ;;  %s924_s8 = sshll.u32 %s1100_s16, 7 }
  0x2c   : > { %p1354_p10 = scmp.ge.s32.totalorder %s1104_s17, 1  ;;  %s1243_s12 = scalar_lea.hbm %s1348_s2, %s924_s8 }
  0x2d   : > { %s186_s18 = scalar_lea.vmem [#allocation4], %s874_s4  ;;  %s183_s30 = scalar_lea.sflag [#allocation5], %s1185_s25 }
  0x2e   : > { %p1236_p4 = pnand %p1354_p10, %p199_p0  ;;  %s194_s20 = sshll.u32 %s186_s18, 4  ;;  %s195_s20 = int_to_ptr.vmem [resolvable:$true] %s194_s20 }
  0x2f   : > { %s1020_s5 = scalar_lea.hbm %s1243_s12, 128  ;;  %s1025_s22 = scalar_lea.hbm %s1348_s2, 256 }
  0x30   : > { %s1355_s9 = scalar_select %p1236_p4, 1, 0 }
  0x31   : > { %p1021_p5 = scmp.ne.s32.totalorder %s1243_s12, %s1020_s5  ;;  %p1026_p11 = scmp.lt.u32.totalorder %s1243_s12, %s1348_s2 }
  0x32   : > { %p1027_p13 = scmp.lt.u32.totalorder %s1025_s22, %s1020_s5  ;;  %p1029_p2 = scmp.lt.u32.totalorder %s1020_s5, %s1243_s12 }
  0x33   : > { %p1023_p6 = pnand %p1021_p5, %p992_p12 }
  0x34   : > { %p1028_p1 = por %p1027_p13, %p1026_p11 }
  0x35   : > { %p1024_p8 = pneg %p1023_p6 }
  0x36   : > { %p1030_p3 = por %p1029_p2, %p1028_p1 }
  0x38   : > { %p1031_p0 = pnand %p1030_p3, %p1024_p8 }
  0x3a   : > { %1034 = shalt.err (!%p1031_p0)
}
  0x3b   : > { %s1035_s25 = scalar_lea.vmem %s195_s20, 128  ;;  %s1110_s28 = smov [#allocation4]  }
  0x3c   : > { %p1036_p10 = scmp.ne.s32.totalorder %s195_s20, %s1035_s25  ;;  %s1040_s29 = sshll.u32 %s1110_s28, 4  ;;  %s1041_s29 = int_to_ptr.vmem [resolvable:$false] %s1040_s29 }
  0x3d   : > { %s1042_s4 = scalar_lea.vmem %s1041_s29, 256  ;;  %p1043_p7 = scmp.lt.s32.totalorder %s195_s20, %s1041_s29 }
  0x3e   : > { %p1038_p5 = pnand %p1036_p10, %p992_p12  ;;  %p1044_p4 = scmp.lt.s32.totalorder %s1042_s4, %s1035_s25 }
  0x40   : > { %p1039_p6 = pneg %p1038_p5  ;;  %p1045_p11 = por %p1044_p4, %p1043_p7 }
  0x42   : > { %p1046_p13 = pnand %p1045_p11, %p1039_p6 }
  0x44   : > { %1049 = shalt.err (!%p1046_p13)
}
  0x45   : > { %935 = dma.hbm_to_vmem [thread:$0]  (!%p1196_p9), %s1243_s12, 128, %s195_s20, %s183_s30  }
  0x46   : > { %p1356_p8 = scmp.ne.s32.totalorder %s1355_s9, 0 }
  0x47   : > { %s205_s8 = sand.u32 (!%p1356_p8), 1, %s1088_s13   ;;  %p1357_p12 = scmp.ne.s32.totalorder (!%p1356_p8), %s1352_s23, 0 }
  0x48   : > { %203 = sbr.rel (%p1356_p8) target bundleno = 347 (0x15b), region = 32  ;;  %s878_s10 = sshll.u32 (!%p1356_p8), %s205_s8, 8 }
  0x49   : > { %s206_s11 = scalar_lea.sflag (!%p1356_p8), [#allocation3], %s205_s8  ;;  %s1268_s18 = scalar_lea.vmem (!%p1356_p8), [#allocation2], %s878_s10 }
  0x4f   : > { %1075 = dma.done.wait (%p1357_p12), %s206_s11, 4096  }
  0x50   : > { %1077 = vsyncadd (%p1357_p12), %s206_s11, 4294963200  ;;  %s879_s5 = sshll.u32 %s205_s8, 3  ;;  %s215_s6 = scalar_lea.sflag [#allocation5], %s205_s8 }
  0x51   : > { %s1274_s7 = scalar_lea.vmem [#allocation4], %s879_s5 }
  0x52   : > { %1079 = dma.done.wait (%p1357_p12), %s215_s6, 128  }
  0x53   : > { %1081 = vsyncadd (%p1357_p12), %s215_s6, 4294967168  ;;  %v1111_v0 = vmov 0   ;;  %v268_v1 = vld [vmem:[%s1268_s18] sm:$0xff]  ;;  %v269_v3 = vld [vmem:[%s1268_s18 + $0x8] sm:$0xff]  ;;  %vm502_vm0 = vcmask 523264   ;;  %s880_s12 = sshll.u32 %s1096_s15, 3 }
  0x54   : > { %538 = vmatprep.mubr.bf16.mxu0 %v1111_v0  ;;  %579 = vmatprep.mubr.bf16.mxu1 %v1111_v0  ;;  %v272_v2 = vld [vmem:[%s1268_s18 + $0x20] sm:$0xff]  ;;  %v273_v5 = vld [vmem:[%s1268_s18 + $0x28] sm:$0xff]  ;;  %v270_v31 = vld [vmem:[%s1268_s18 + $0x10] sm:$0xff]  ;;  %p260_p7 = scmp.lt.s32.totalorder %s880_s12, 15 }
  0x55   : > { %v882_v4 = vcombine.high %v268_v1, %v272_v2  ;;  %v881_v6 = vcombine.low %v268_v1, %v272_v2  ;;  %v276_v7 = vld [vmem:[%s1268_s18 + $0x40] sm:$0xff]  ;;  %v884_v9 = vcombine.high %v269_v3, %v273_v5  ;;  %v883_v10 = vcombine.low %v269_v3, %v273_v5  ;;  %v277_v12 = vld [vmem:[%s1268_s18 + $0x48] sm:$0xff]  ;;  %v274_v32 = vld [vmem:[%s1268_s18 + $0x30] sm:$0xff] }
  0x56   : > { %v280_v8 = vld [vmem:[%s1268_s18 + $0x60] sm:$0xff]  ;;  %v281_v13 = vld [vmem:[%s1268_s18 + $0x68] sm:$0xff]  ;;  %v271_v33 = vld [vmem:[%s1268_s18 + $0x18] sm:$0xff]  ;;  %v886_v37 = vcombine.high %v270_v31, %v274_v32  ;;  %v885_v44 = vcombine.low %v270_v31, %v274_v32  ;;  %s1366_s12 = smov (!%p260_p7, %s880_s12), 15 }
  0x57   : > { %v890_v11 = vcombine.high %v276_v7, %v280_v8  ;;  %v284_v14 = vld [vmem:[%s1268_s18 + $0x80] sm:$0xff]  ;;  %506 = vmatprep.subr.bf16.mxu0 %v882_v4  ;;  %v892_v15 = vcombine.high %v277_v12, %v281_v13  ;;  %v285_v17 = vld [vmem:[%s1268_s18 + $0x88] sm:$0xff]  ;;  %547 = vmatprep.subr.bf16.mxu1 %v884_v9  ;;  %v889_v19 = vcombine.low %v276_v7, %v280_v8  ;;  %v275_v34 = vld [vmem:[%s1268_s18 + $0x38] sm:$0xff]  ;;  %v1112_v9 = vmov 1966171168   ;;  %s264_s15 = scalar_lea.vmem %s1349_s3, %s1366_s12 }
  0x58   : > { %v288_v16 = vld [vmem:[%s1268_s18 + $0xa0] sm:$0xff]  ;;  %v289_v18 = vld [vmem:[%s1268_s18 + $0xa8] sm:$0xff]  ;;  %507 = vmatpush1.bf16.msra.mxu0 %v881_v6  ;;  %548 = vmatpush1.bf16.msra.mxu1 %v883_v10  ;;  %v891_v20 = vcombine.low %v277_v12, %v281_v13  ;;  %v888_v38 = vcombine.high %v271_v33, %v275_v34  ;;  %v278_v39 = vld [vmem:[%s1268_s18 + $0x50] sm:$0xff]  ;;  %v887_v45 = vcombine.low %v271_v33, %v275_v34  ;;  %v699_v10 = vunpack.c.l.s4 %v1112_v9 }
  0x59   : > { %508 = vmatprep.subr.bf16.mxu0 %v890_v11  ;;  %v898_v21 = vcombine.high %v284_v14, %v288_v16  ;;  %549 = vmatprep.subr.bf16.mxu1 %v892_v15  ;;  %v900_v22 = vcombine.high %v285_v17, %v289_v18  ;;  %v292_v23 = vld [vmem:[%s1268_s18 + $0xc0] sm:$0xff]  ;;  %v293_v25 = vld [vmem:[%s1268_s18 + $0xc8] sm:$0xff]  ;;  %v897_v27 = vcombine.low %v284_v14, %v288_v16  ;;  %v282_v40 = vld [vmem:[%s1268_s18 + $0x70] sm:$0xff] }
  0x5a   : > { %v296_v24 = vld [vmem:[%s1268_s18 + $0xe0] sm:$0xff]  ;;  %v297_v26 = vld [vmem:[%s1268_s18 + $0xe8] sm:$0xff]  ;;  %v899_v28 = vcombine.low %v285_v17, %v289_v18  ;;  %v279_v41 = vld [vmem:[%s1268_s18 + $0x58] sm:$0xff]  ;;  %v894_v46 = vcombine.high %v278_v39, %v282_v40  ;;  %v893_v52 = vcombine.low %v278_v39, %v282_v40  ;;  %v700_v16 = vunpack.c.0.s8 %v699_v10 }
  0x5b   : > { %v906_v29 = vcombine.high %v292_v23, %v296_v24  ;;  %v908_v30 = vcombine.high %v293_v25, %v297_v26  ;;  %v905_v35 = vcombine.low %v292_v23, %v296_v24  ;;  %v907_v36 = vcombine.low %v293_v25, %v297_v26  ;;  %v283_v42 = vld [vmem:[%s1268_s18 + $0x78] sm:$0xff]  ;;  %v267_v43 = vld [vmem:[%s1346_s0] sm:$0x1]  ;;  %v286_v48 = vld [vmem:[%s1268_s18 + $0x90] sm:$0xff] }
  0x5c   : > { %509 = vmatpush1.bf16.msra.mxu0 %v889_v19  ;;  %550 = vmatpush1.bf16.msra.mxu1 %v891_v20  ;;  %v896_v47 = vcombine.high %v279_v41, %v283_v42  ;;  %v290_v49 = vld [vmem:[%s1268_s18 + $0xb0] sm:$0xff]  ;;  %v287_v50 = vld [vmem:[%s1268_s18 + $0x98] sm:$0xff]  ;;  %v895_v53 = vcombine.low %v279_v41, %v283_v42  ;;  %v300_v5 = vld [vmem:[%s1274_s7] sm:$0xff] }
  0x5d   : > { %510 = vmatprep.subr.bf16.mxu0 %v898_v21  ;;  %551 = vmatprep.subr.bf16.mxu1 %v900_v22  ;;  %v291_v51 = vld [vmem:[%s1268_s18 + $0xb8] sm:$0xff]  ;;  %v902_v54 = vcombine.high %v286_v48, %v290_v49  ;;  %v294_v56 = vld [vmem:[%s1268_s18 + $0xd0] sm:$0xff]  ;;  %v901_v60 = vcombine.low %v286_v48, %v290_v49 }
  0x5e   : > { %v904_v55 = vcombine.high %v287_v50, %v291_v51  ;;  %v298_v57 = vld [vmem:[%s1268_s18 + $0xf0] sm:$0xff]  ;;  %v295_v58 = vld [vmem:[%s1268_s18 + $0xd8] sm:$0xff]  ;;  %v903_v61 = vcombine.low %v287_v50, %v291_v51 }
  0x5f   : > { %v299_v59 = vld [vmem:[%s1268_s18 + $0xf8] sm:$0xff]  ;;  %v910_v62 = vcombine.high %v294_v56, %v298_v57  ;;  %v909_v1 = vcombine.low %v294_v56, %v298_v57 }
  0x60   : > { %511 = vmatpush1.bf16.msra.mxu0 %v897_v27  ;;  %552 = vmatpush1.bf16.msra.mxu1 %v899_v28  ;;  %v912_v63 = vcombine.high %v295_v58, %v299_v59  ;;  %v911_v2 = vcombine.low %v295_v58, %v299_v59 }
  0x61   : > { %512 = vmatprep.subr.bf16.mxu0 %v906_v29  ;;  %553 = vmatprep.subr.bf16.mxu1 %v908_v30 }
  0x64   : > { %513 = vmatpush1.bf16.msra.mxu0 %v905_v35  ;;  %554 = vmatpush1.bf16.msra.mxu1 %v907_v36 }
  0x65   : > { %588 = vmatprep.subr.bf16.mxu0 %v886_v37  ;;  %629 = vmatprep.subr.bf16.mxu1 %v888_v38 }
  0x67   : > { %913 = vmatmul.mubr.msk.bf16.vlgmr.msra.gmra.mrb[0].mxu0 %vm502_vm0, %v267_v43  ;;  %914 = vmatmul.mubr.msk.bf16.vlgmr.msra.gmra.mrb[0].mxu1 %vm502_vm0, %v267_v43 }
  0x68   : > { %589 = vmatpush1.bf16.msra.mxu0 %v885_v44  ;;  %630 = vmatpush1.bf16.msra.mxu1 %v887_v45 }
  0x69   : > { %590 = vmatprep.subr.bf16.mxu0 %v894_v46  ;;  %631 = vmatprep.subr.bf16.mxu1 %v896_v47 }
  0x6a   : > { %620 = vmatprep.mubr.bf16.mxu0 %v1111_v0  ;;  %661 = vmatprep.mubr.bf16.mxu1 %v1111_v0  ;;  %v302_v0 = vlaneseq }
  0x6c   : > { %591 = vmatpush1.bf16.msra.mxu0 %v893_v52  ;;  %632 = vmatpush1.bf16.msra.mxu1 %v895_v53  ;;  %v303_v3 = vshrl.u32 %v302_v0, 7 }
  0x6d   : > { %592 = vmatprep.subr.bf16.mxu0 %v902_v54  ;;  %633 = vmatprep.subr.bf16.mxu1 %v904_v55 }
  0x6e   : > { %v304_v4 = vsub.s32 0, %v303_v3  ;;  %v312_v6 = vsub.s32 2, %v303_v3  ;;  %v308_v7 = vsub.s32 1, %v303_v3  ;;  %v316_v8 = vsub.s32 3, %v303_v3 }
  0x6f   : > { %v703_v30 = vsub.s32 %v700_v16, %v303_v3  ;;  %v320_v37 = vsub.s32 4, %v303_v3  ;;  %v328_v38 = vsub.s32 6, %v303_v3  ;;  %v324_v39 = vsub.s32 5, %v303_v3 }
  0x70   : > { %593 = vmatpush1.bf16.msra.mxu0 %v901_v60  ;;  %634 = vmatpush1.bf16.msra.mxu1 %v903_v61  ;;  %v305_v11 = vrot.slane %v300_v5, %v304_v4  ;;  %v313_v12 = vrot.slane %v300_v5, %v312_v6  ;;  %v309_v13 = vrot.slane %v300_v5, %v308_v7  ;;  %v332_v41 = vsub.s32 7, %v303_v3 }
  0x71   : > { %594 = vmatprep.subr.bf16.mxu0 %v910_v62  ;;  %635 = vmatprep.subr.bf16.mxu1 %v912_v63  ;;  %v317_v14 = vrot.slane %v300_v5, %v316_v8  ;;  %v321_v42 = vrot.slane %v300_v5, %v320_v37  ;;  %v325_v44 = vrot.slane %v300_v5, %v324_v39 }
  0x72   : > { %v333_v45 = vrot.slane %v300_v5, %v332_v41 }
  0x74   : > { %595 = vmatpush1.bf16.msra.mxu0 %v909_v1  ;;  %636 = vmatpush1.bf16.msra.mxu1 %v911_v2 }
  0x77   : > { %915 = vmatmul.mubr.msk.bf16.vlgmr.msra.gmra.mrb[4].mxu0 %vm502_vm0, %v267_v43  ;;  %916 = vmatmul.mubr.msk.bf16.vlgmr.msra.gmra.mrb[4].mxu1 %vm502_vm0, %v267_v43  ;;  %v329_v43 = vrot.slane %v300_v5, %v328_v38 }
 0x13a   : > { %v540_v15 = vpop.f32.mrb[0].mxu0  ;;  %v581_v18 = vpop.f32.mrb[0].mxu1 }
 0x13b   : > { %v541_v17 = vadd.f32 %v540_v15, %v305_v11  ;;  %v542_v19 = vpop.f32.mrb[1].mxu0  ;;  %v582_v20 = vadd.f32 %v581_v18, %v313_v12  ;;  %v583_v22 = vpop.f32.mrb[1].mxu1 }
 0x13c   : > { %v543_v21 = vadd.f32 %v542_v19, %v309_v13  ;;  %v544_v23 = vpop.f32.mrb[2].mxu0  ;;  %v584_v25 = vadd.f32 %v583_v22, %v317_v14  ;;  %v585_v26 = vpop.f32.mrb[2].mxu1 }
 0x13d   : > { %v670_v24 = vmax.f32 %v541_v17, 0.0  ;;  %v545_v27 = vpop.f32.mrb[3].mxu0  ;;  %v672_v28 = vmax.f32 %v582_v20, 0.0  ;;  %v586_v31 = vpop.f32.mrb[3].mxu1 }
 0x13e   : > { %v671_v29 = vmax.f32 %v543_v21, 0.0  ;;  %v673_v32 = vmax.f32 %v584_v25, 0.0 }
 0x140   : > { %v917_v33 = vpack.c.bf16 %v671_v29, %v670_v24  ;;  %v918_v34 = vpack.c.bf16 %v673_v32, %v672_v28 }
 0x142   : > { %v704_v35 = vrot.slane %v917_v33, %v703_v30  ;;  %v711_v36 = vrot.slane %v918_v34, %v703_v30 }
 0x144   : > { %v726_v40 = vcombine.low %v704_v35, %v711_v36 }
 0x146   : > { %v734_v3 = vrot.slane %v726_v40, %v703_v30 }
 0x14a   : > { %v622_v46 = vpop.f32.mrb[4].mxu0  ;;  %v663_v48 = vpop.f32.mrb[4].mxu1 }
 0x14b   : > { %v623_v47 = vadd.f32 %v622_v46, %v321_v42  ;;  %v624_v49 = vpop.f32.mrb[5].mxu0  ;;  %v664_v50 = vadd.f32 %v663_v48, %v329_v43  ;;  %v665_v52 = vpop.f32.mrb[5].mxu1 }
 0x14c   : > { %v625_v51 = vadd.f32 %v624_v49, %v325_v44  ;;  %v626_v53 = vpop.f32.mrb[6].mxu0  ;;  %v666_v55 = vadd.f32 %v665_v52, %v333_v45  ;;  %v667_v56 = vpop.f32.mrb[6].mxu1 }
 0x14d   : > { %v674_v54 = vmax.f32 %v623_v47, 0.0  ;;  %v627_v57 = vpop.f32.mrb[7].mxu0  ;;  %v676_v58 = vmax.f32 %v664_v50, 0.0  ;;  %v668_v60 = vpop.f32.mrb[7].mxu1 }
 0x14e   : > { %v675_v59 = vmax.f32 %v625_v51, 0.0  ;;  %v677_v61 = vmax.f32 %v666_v55, 0.0 }
 0x150   : > { %v919_v62 = vpack.c.bf16 %v675_v59, %v674_v54  ;;  %v920_v63 = vpack.c.bf16 %v677_v61, %v676_v58 }
 0x152   : > { %v718_v1 = vrot.slane %v919_v62, %v703_v30  ;;  %v725_v2 = vrot.slane %v920_v63, %v703_v30 }
 0x154   : > { %v727_v0 = vcombine.low %v718_v1, %v725_v2 }
 0x156   : > { %v741_v4 = vrot.slane %v727_v0, %v703_v30 }
 0x158   : > { %v742_v5 = vcombine.low %v734_v3, %v741_v4 }
 0x15a   : > { %744 = vst [vmem:[%s264_s15] sm:$0xff] %v742_v5 }
 0x15b PF: > { %s19_s17 = sadd.s32 1, %s1104_s17   ;;  %s1358_s12 = smov %s1088_s13 }
 0x15c   : > { %p16_p9 = scmp.ge.s32.totalorder %s19_s17, 4   ;;  %s1359_s13 = smov %s1092_s14 }
 0x15d   : > { %s1360_s14 = smov %s1182_s24  ;;  %s1361_s15 = smov %s1100_s16 }
 0x15e   : > { %s1362_s16 = smov %s1364_s19  ;;  %18 = sbr.rel (!%p16_p9) target bundleno = 6 (0x6), region = 88 }
 0x165   :  { %773 = vsyncpa [#allocation3], 1 }
 0x166   :  { %775 = vsyncpa [#allocation3 + $0x1], 1 }
 0x167   :  { %776 = vsyncpa [#allocation5], 1 }
 0x168   :  { %778 = vsyncpa [#allocation5 + $0x1], 1 }

// kernel: wgan_generator_forward.3
= control target key start
LH: loop header
LB: loop body
LE: loop exit
PB: predicated region body
PF: predicated region fallthrough
CT: control target
= control target key end

     0   :  { %12 = vsyncpa [#allocation3], 0  ;;  %s2224_s0 = inlined_call_operand.vmem [shape: bf16[32,128], index: 0, kind: input, shape index: {}]   ;;  %s2225_s1 = inlined_call_operand.hbm [shape: bf16[128,256], index: 1, kind: input, shape index: {}]   ;;  %s2226_s2 = inlined_call_operand.hbm [shape: f32[1,256], index: 2, kind: input, shape index: {}]   ;;  %s2227_s3 = inlined_call_operand.hbm [shape: bf16[256,512], index: 3, kind: input, shape index: {}]   ;;  %s2228_s4 = inlined_call_operand.hbm [shape: f32[1,512], index: 4, kind: input, shape index: {}]   ;;  %s2229_s5 = inlined_call_operand.vmem [shape: bf16[512,192], index: 5, kind: input, shape index: {}]   ;;  %s2230_s6 = inlined_call_operand.hbm [shape: f32[1,192], index: 6, kind: input, shape index: {}]   ;;  %s2231_s7 = inlined_call_operand.vmem [shape: f32[32,192], index: 7, kind: output, shape index: {}]  }
   0x1   :  { %13 = vsyncpa [#allocation5], 0 }
   0x2   :  { %14 = vsyncpa [#allocation8], 0  ;;  %s1862_s24 = smov [#allocation4]   ;;  %s1863_s26 = smov [#allocation7]  }
   0x3   :  { %s35_s25 = sshll.u32 %s1862_s24, 4  ;;  %s57_s27 = sshll.u32 %s1863_s26, 4  ;;  %s36_s25 = int_to_ptr.vmem [resolvable:$true] %s35_s25  ;;  %s58_s27 = int_to_ptr.vmem [resolvable:$true] %s57_s27 }
   0x4   :  { %s1746_s30 = scalar_lea.hbm %s2226_s2, 32 }
   0x5   :  { %p1747_p0 = scmp.ne.s32.totalorder %s2226_s2, %s1746_s30  ;;  %p1750_p1 = scmp.lt.u32.totalorder %s1746_s30, %s2226_s2 }
   0x7   :  { %p1752_p2 = pnand %p1750_p1, %p1747_p0 }
   0x9   :  { %1755 = shalt.err (!%p1752_p2)
}
   0xa   :  { %s1756_s12 = scalar_lea.vmem %s36_s25, 32  ;;  %p1761_p4 = scmp.lt.s32.totalorder %s36_s25, %s36_s25 }
   0xb   :  { %p1757_p3 = scmp.ne.s32.totalorder %s36_s25, %s1756_s12  ;;  %p1762_p5 = scmp.lt.s32.totalorder %s1756_s12, %s1756_s12 }
   0xd   :  { %p1763_p6 = por %p1762_p5, %p1761_p4 }
   0xf   :  { %p1764_p7 = pnand %p1763_p6, %p1757_p3 }
  0x11   :  { %1767 = shalt.err (!%p1764_p7)
}
  0x12   :  { %38 = dma.hbm_to_vmem [thread:$0]  %s2226_s2, 32, %s36_s25, [#allocation5]  }
  0x13   :  { %s1768_s17 = scalar_lea.hbm %s2228_s4, 64 }
  0x14   :  { %p1769_p8 = scmp.ne.s32.totalorder %s2228_s4, %s1768_s17  ;;  %p1772_p9 = scmp.lt.u32.totalorder %s1768_s17, %s2228_s4 }
  0x16   :  { %p1774_p10 = pnand %p1772_p9, %p1769_p8 }
  0x18   :  { %1777 = shalt.err (!%p1774_p10)
}
  0x19   :  { %s1778_s22 = scalar_lea.vmem %s58_s27, 64  ;;  %p1783_p12 = scmp.lt.s32.totalorder %s58_s27, %s58_s27 }
  0x1a   :  { %p1779_p11 = scmp.ne.s32.totalorder %s58_s27, %s1778_s22  ;;  %p1784_p13 = scmp.lt.s32.totalorder %s1778_s22, %s1778_s22 }
  0x1c   :  { %p1785_p0 = por %p1784_p13, %p1783_p12 }
  0x1e   :  { %p1786_p1 = pnand %p1785_p0, %p1779_p11 }
  0x20   :  { %1789 = shalt.err (!%p1786_p1)
}
  0x21   :  { %60 = dma.hbm_to_vmem [thread:$0]  %s2228_s4, 64, %s58_s27, [#allocation8]  }
  0x22   :  { %s1864_s24 = smov [#allocation2]   ;;  %s1790_s29 = scalar_lea.hbm %s2225_s1, 2048 }
  0x23   :  { %s22_s25 = sshll.u32 %s1864_s24, 4  ;;  %p1791_p2 = scmp.ne.s32.totalorder %s2225_s1, %s1790_s29  ;;  %s23_s25 = int_to_ptr.vmem [resolvable:$true] %s22_s25 }
  0x24   :  { %p1794_p3 = scmp.lt.u32.totalorder %s1790_s29, %s2225_s1 }
  0x26   :  { %p1796_p4 = pnand %p1794_p3, %p1791_p2 }
  0x28   :  { %1799 = shalt.err (!%p1796_p4)
}
  0x29   :  { %s1800_s11 = scalar_lea.vmem %s23_s25, 2048  ;;  %p1805_p6 = scmp.lt.s32.totalorder %s23_s25, %s23_s25 }
  0x2a   :  { %p1801_p5 = scmp.ne.s32.totalorder %s23_s25, %s1800_s11  ;;  %p1806_p7 = scmp.lt.s32.totalorder %s1800_s11, %s1800_s11 }
  0x2c   :  { %p1807_p8 = por %p1806_p7, %p1805_p6 }
  0x2e   :  { %p1808_p9 = pnand %p1807_p8, %p1801_p5 }
  0x30   :  { %1811 = shalt.err (!%p1808_p9)
}
  0x31   :  { %s1865_s4 = smov 128   ;;  %s1866_s27 = smov 8  }
  0x32   :  { %28 = dma.hbm_to_vmem [thread:$0]  %s2225_s1, 2048, %s23_s25, [#allocation3], %s1865_s4, %s1865_s4, %s1866_s27  }
  0x33   :  { %s1867_s14 = smov [#allocation6]   ;;  %s1812_s18 = scalar_lea.hbm %s2227_s3, 8192 }
  0x34   :  { %s44_s15 = sshll.u32 %s1867_s14, 4  ;;  %p1813_p10 = scmp.ne.s32.totalorder %s2227_s3, %s1812_s18  ;;  %s45_s15 = int_to_ptr.vmem [resolvable:$true] %s44_s15 }
  0x35   :  { %p1816_p11 = scmp.lt.u32.totalorder %s1812_s18, %s2227_s3 }
  0x37   :  { %p1818_p12 = pnand %p1816_p11, %p1813_p10 }
  0x39   :  { %1821 = shalt.err (!%p1818_p12)
}
  0x3a   :  { %s1822_s2 = scalar_lea.vmem %s45_s15, 8192  ;;  %p1827_p0 = scmp.lt.s32.totalorder %s45_s15, %s45_s15 }
  0x3b   :  { %p1823_p13 = scmp.ne.s32.totalorder %s45_s15, %s1822_s2  ;;  %p1828_p1 = scmp.lt.s32.totalorder %s1822_s2, %s1822_s2 }
  0x3d   :  { %p1829_p2 = por %p1828_p1, %p1827_p0 }
  0x3f   :  { %p1830_p3 = pnand %p1829_p2, %p1823_p13 }
  0x41   :  { %1833 = shalt.err (!%p1830_p3)
}
  0x42   :  { %s1868_s1 = smov 256   ;;  %s1869_s23 = smov 16  }
  0x43   :  { %50 = dma.hbm_to_vmem [thread:$0]  %s2227_s3, 8192, %s45_s15, [#allocation5], %s1868_s1, %s1868_s1, %s1869_s23  }
  0x44   :  { %s1870_s26 = smov [#allocation9]   ;;  %s1834_s8 = scalar_lea.hbm %s2230_s6, 32 }
  0x45   :  { %s69_s28 = sshll.u32 %s1870_s26, 4  ;;  %p1835_p4 = scmp.ne.s32.totalorder %s2230_s6, %s1834_s8  ;;  %s70_s28 = int_to_ptr.vmem [resolvable:$true] %s69_s28 }
  0x46   :  { %p1838_p5 = scmp.lt.u32.totalorder %s1834_s8, %s2230_s6 }
  0x48   :  { %p1840_p6 = pnand %p1838_p5, %p1835_p4 }
  0x4a   :  { %1843 = shalt.err (!%p1840_p6)
}
  0x4b   :  { %s1844_s27 = scalar_lea.vmem %s70_s28, 32  ;;  %p1849_p8 = scmp.lt.s32.totalorder %s70_s28, %s70_s28 }
  0x4c   :  { %p1845_p7 = scmp.ne.s32.totalorder %s70_s28, %s1844_s27  ;;  %p1850_p9 = scmp.lt.s32.totalorder %s1844_s27, %s1844_s27 }
  0x4e   :  { %p1851_p10 = por %p1850_p9, %p1849_p8 }
  0x50   :  { %p1852_p11 = pnand %p1851_p10, %p1845_p7 }
  0x52   :  { %1855 = shalt.err (!%p1852_p11)
}
  0x53   :  { %72 = dma.hbm_to_vmem [thread:$0]  %s2230_s6, 32, %s70_s28, [#allocation8]  }
  0x54   :  { %1856 = dma.done.wait [#allocation3], 2048  }
  0x55   :  { %1857 = vsyncadd [#allocation3], 4294965248 }
  0x56   :  { %1858 = dma.done.wait [#allocation5], 8224  }
  0x57   :  { %1859 = vsyncadd [#allocation5], 4294959072 }
  0x58   :  { %1860 = dma.done.wait [#allocation8], 96  }
  0x59   :  { %1861 = vsyncadd [#allocation8], 4294967200  ;;  %v1871_v0 = vmov 0   ;;  %v1512_v1 = vld [vmem:[#allocation2 + $0x4] ss:$8 sps:$4 sm:$0xff]   ;;  %vm1325_vm0 = vcmask 523264  }
  0x5a   :  { %245 = vmatprep.mubr.bf16.mxu0 %v1871_v0  ;;  %v1514_v2 = vld [vmem:[#allocation2] ss:$8 sps:$4 sm:$0xff]   ;;  %213 = vmatprep.subr.bf16.mxu0 %v1512_v1  ;;  %v1515_v3 = vld [vmem:[#allocation2 + $0x14] ss:$8 sps:$4 sm:$0xff]   ;;  %v1517_v4 = vld [vmem:[#allocation2 + $0x10] ss:$8 sps:$4 sm:$0xff]  }
  0x5b   :  { %214 = vmatpush1.bf16.msra.mxu0 %v1514_v2  ;;  %v1518_v5 = vld [vmem:[#allocation2 + $0x24] ss:$8 sps:$4 sm:$0xff]   ;;  %v1520_v6 = vld [vmem:[#allocation2 + $0x20] ss:$8 sps:$4 sm:$0xff]   ;;  %v1521_v7 = vld [vmem:[#allocation2 + $0x34] ss:$8 sps:$4 sm:$0xff]  }
  0x5c   :  { %215 = vmatprep.subr.bf16.mxu0 %v1515_v3  ;;  %v1523_v8 = vld [vmem:[#allocation2 + $0x30] ss:$8 sps:$4 sm:$0xff]   ;;  %v1524_v9 = vld [vmem:[#allocation2 + $0x44] ss:$8 sps:$4 sm:$0xff]   ;;  %v1526_v10 = vld [vmem:[#allocation2 + $0x40] ss:$8 sps:$4 sm:$0xff]  }
  0x5d   :  { %v1527_v11 = vld [vmem:[#allocation2 + $0x54] ss:$8 sps:$4 sm:$0xff]   ;;  %v1529_v12 = vld [vmem:[#allocation2 + $0x50] ss:$8 sps:$4 sm:$0xff]   ;;  %v1530_v13 = vld [vmem:[#allocation2 + $0x64] ss:$8 sps:$4 sm:$0xff]  }
  0x5e   :  { %v1532_v14 = vld [vmem:[#allocation2 + $0x60] ss:$8 sps:$4 sm:$0xff]   ;;  %v1533_v15 = vld [vmem:[#allocation2 + $0x74] ss:$8 sps:$4 sm:$0xff]   ;;  %v1535_v16 = vld [vmem:[#allocation2 + $0x70] ss:$8 sps:$4 sm:$0xff]  }
  0x5f   :  { %216 = vmatpush1.bf16.msra.mxu0 %v1517_v4  ;;  %v1540_v17 = vld [vmem:[#allocation6 + $0x4] ss:$16 sps:$4 sm:$0xff]   ;;  %v1538_v19 = vld [vmem:[#allocation6] ss:$16 sps:$4 sm:$0xff]   ;;  %v1588_v51 = vld [vmem:[#allocation6 + $0xc] ss:$16 sps:$4 sm:$0xff]  }
  0x60   :  { %217 = vmatprep.subr.bf16.mxu0 %v1518_v5  ;;  %v1536_v18 = vld [vmem:[%s2224_s0] sm:$0xff]   ;;  %v1537_v23 = vld [vmem:[%s2224_s0 + $0x8] sm:$0xff]   ;;  %v1637_v54 = vld [vmem:[%s2229_s5 + $0x14] ss:$8 sps:$4 sm:$0xff]   ;;  %v111_v5 = vlaneseq }
  0x61   :  { %v1543_v20 = vld [vmem:[#allocation6 + $0x24] ss:$16 sps:$4 sm:$0xff]   ;;  %v1541_v21 = vld [vmem:[#allocation6 + $0x20] ss:$16 sps:$4 sm:$0xff]  }
  0x62   :  { %v1546_v22 = vld [vmem:[#allocation6 + $0x44] ss:$16 sps:$4 sm:$0xff]   ;;  %v1544_v24 = vld [vmem:[#allocation6 + $0x40] ss:$16 sps:$4 sm:$0xff]  }
  0x63   :  { %218 = vmatpush1.bf16.msra.mxu0 %v1520_v6  ;;  %v1549_v25 = vld [vmem:[#allocation6 + $0x64] ss:$16 sps:$4 sm:$0xff]   ;;  %v1547_v26 = vld [vmem:[#allocation6 + $0x60] ss:$16 sps:$4 sm:$0xff]  }
  0x64   :  { %219 = vmatprep.subr.bf16.mxu0 %v1521_v7  ;;  %v1552_v27 = vld [vmem:[#allocation6 + $0x84] ss:$16 sps:$4 sm:$0xff]   ;;  %v1550_v28 = vld [vmem:[#allocation6 + $0x80] ss:$16 sps:$4 sm:$0xff]  }
  0x65   :  { %v1555_v29 = vld [vmem:[#allocation6 + $0xa4] ss:$16 sps:$4 sm:$0xff]   ;;  %v1553_v30 = vld [vmem:[#allocation6 + $0xa0] ss:$16 sps:$4 sm:$0xff]  }
  0x66   :  { %v1558_v31 = vld [vmem:[#allocation6 + $0xc4] ss:$16 sps:$4 sm:$0xff]   ;;  %v1556_v32 = vld [vmem:[#allocation6 + $0xc0] ss:$16 sps:$4 sm:$0xff]  }
  0x67   :  { %220 = vmatpush1.bf16.msra.mxu0 %v1523_v8  ;;  %v1561_v33 = vld [vmem:[#allocation6 + $0xe4] ss:$16 sps:$4 sm:$0xff]   ;;  %v1559_v34 = vld [vmem:[#allocation6 + $0xe0] ss:$16 sps:$4 sm:$0xff]   ;;  %v2035_v8 = vshrl.u32 %v111_v5, 7 }
  0x68   :  { %221 = vmatprep.subr.bf16.mxu0 %v1524_v9  ;;  %v1564_v35 = vld [vmem:[#allocation6 + $0x104] ss:$16 sps:$4 sm:$0xff]   ;;  %v1562_v36 = vld [vmem:[#allocation6 + $0x100] ss:$16 sps:$4 sm:$0xff]   ;;  %v1613_v5 = vld [vmem:[#allocation6 + $0x128] ss:$16 sps:$4 sm:$0xff]  }
  0x69   :  { %v1567_v37 = vld [vmem:[#allocation6 + $0x124] ss:$16 sps:$4 sm:$0xff]   ;;  %v1565_v38 = vld [vmem:[#allocation6 + $0x120] ss:$16 sps:$4 sm:$0xff]  }
  0x6a   :  { %v1570_v39 = vld [vmem:[#allocation6 + $0x144] ss:$16 sps:$4 sm:$0xff]   ;;  %v1568_v40 = vld [vmem:[#allocation6 + $0x140] ss:$16 sps:$4 sm:$0xff]  }
  0x6b   :  { %222 = vmatpush1.bf16.msra.mxu0 %v1526_v10  ;;  %v1573_v41 = vld [vmem:[#allocation6 + $0x164] ss:$16 sps:$4 sm:$0xff]   ;;  %v1571_v42 = vld [vmem:[#allocation6 + $0x160] ss:$16 sps:$4 sm:$0xff]  }
  0x6c   :  { %223 = vmatprep.subr.bf16.mxu0 %v1527_v11  ;;  %v1576_v43 = vld [vmem:[#allocation6 + $0x184] ss:$16 sps:$4 sm:$0xff]   ;;  %v1574_v44 = vld [vmem:[#allocation6 + $0x180] ss:$16 sps:$4 sm:$0xff]   ;;  %v2044_v11 = vsub.s32 0, %v2035_v8 }
  0x6d   :  { %v1579_v45 = vld [vmem:[#allocation6 + $0x1a4] ss:$16 sps:$4 sm:$0xff]   ;;  %v1577_v46 = vld [vmem:[#allocation6 + $0x1a0] ss:$16 sps:$4 sm:$0xff]  }
  0x6e   :  { %v1582_v47 = vld [vmem:[#allocation6 + $0x1c4] ss:$16 sps:$4 sm:$0xff]   ;;  %v1580_v48 = vld [vmem:[#allocation6 + $0x1c0] ss:$16 sps:$4 sm:$0xff]  }
  0x6f   :  { %224 = vmatpush1.bf16.msra.mxu0 %v1529_v12  ;;  %v1585_v49 = vld [vmem:[#allocation6 + $0x1e4] ss:$16 sps:$4 sm:$0xff]   ;;  %v1583_v50 = vld [vmem:[#allocation6 + $0x1e0] ss:$16 sps:$4 sm:$0xff]   ;;  %v109_v12 = vld [vmem:[#allocation4] sm:$0x3] }
  0x70   :  { %225 = vmatprep.subr.bf16.mxu0 %v1530_v13  ;;  %v1634_v52 = vld [vmem:[%s2229_s5 + $0x4] ss:$8 sps:$4 sm:$0xff]   ;;  %v1636_v53 = vld [vmem:[%s2229_s5] ss:$8 sps:$4 sm:$0xff]   ;;  %v1639_v55 = vld [vmem:[%s2229_s5 + $0x10] ss:$8 sps:$4 sm:$0xff]  }
  0x71   :  { %1210 = vmatprep.subr.bf16.mxu1 %v1634_v52  ;;  %v1640_v56 = vld [vmem:[%s2229_s5 + $0x24] ss:$8 sps:$4 sm:$0xff]   ;;  %v1642_v57 = vld [vmem:[%s2229_s5 + $0x20] ss:$8 sps:$4 sm:$0xff]   ;;  %v1643_v58 = vld [vmem:[%s2229_s5 + $0x34] ss:$8 sps:$4 sm:$0xff]  }
  0x72   :  { %1211 = vmatpush1.bf16.msra.mxu1 %v1636_v53  ;;  %v1645_v59 = vld [vmem:[%s2229_s5 + $0x30] ss:$8 sps:$4 sm:$0xff]   ;;  %v1646_v60 = vld [vmem:[%s2229_s5 + $0x44] ss:$8 sps:$4 sm:$0xff]   ;;  %v1648_v61 = vld [vmem:[%s2229_s5 + $0x40] ss:$8 sps:$4 sm:$0xff]  }
  0x73   :  { %226 = vmatpush1.bf16.msra.mxu0 %v1532_v14  ;;  %1212 = vmatprep.subr.bf16.mxu1 %v1637_v54  ;;  %v1649_v62 = vld [vmem:[%s2229_s5 + $0x54] ss:$8 sps:$4 sm:$0xff]   ;;  %v1651_v63 = vld [vmem:[%s2229_s5 + $0x50] ss:$8 sps:$4 sm:$0xff]   ;;  %v1654_v1 = vld [vmem:[%s2229_s5 + $0x60] ss:$8 sps:$4 sm:$0xff]  }
  0x74   :  { %227 = vmatprep.subr.bf16.mxu0 %v1533_v15  ;;  %v1655_v2 = vld [vmem:[%s2229_s5 + $0x74] ss:$8 sps:$4 sm:$0xff]   ;;  %v1657_v3 = vld [vmem:[%s2229_s5 + $0x70] ss:$8 sps:$4 sm:$0xff]   ;;  %v1658_v4 = vld [vmem:[%s2229_s5 + $0x84] ss:$8 sps:$4 sm:$0xff]  }
  0x75   :  { %v1660_v6 = vld [vmem:[%s2229_s5 + $0x80] ss:$8 sps:$4 sm:$0xff]   ;;  %v1661_v7 = vld [vmem:[%s2229_s5 + $0x94] ss:$8 sps:$4 sm:$0xff]   ;;  %v1663_v9 = vld [vmem:[%s2229_s5 + $0x90] ss:$8 sps:$4 sm:$0xff]  }
  0x76   :  { %1213 = vmatpush1.bf16.msra.mxu1 %v1639_v55  ;;  %v1664_v10 = vld [vmem:[%s2229_s5 + $0xa4] ss:$8 sps:$4 sm:$0xff]   ;;  %v2047_v13 = vsub.s32 1, %v2035_v8  ;;  %v1666_v14 = vld [vmem:[%s2229_s5 + $0xa0] ss:$8 sps:$4 sm:$0xff]  }
  0x77   :  { %228 = vmatpush1.bf16.msra.mxu0 %v1535_v16  ;;  %1214 = vmatprep.subr.bf16.mxu1 %v1640_v56  ;;  %v1667_v15 = vld [vmem:[%s2229_s5 + $0xb4] ss:$8 sps:$4 sm:$0xff]   ;;  %v114_v16 = vrot.slane %v109_v12, %v2044_v11 }
  0x78   :  { %684 = vmatprep.subr.bf16.mxu0 %v1540_v17  ;;  %v118_v17 = vrot.slane %v109_v12, %v2047_v13  ;;  %v1592_v55 = vld [vmem:[#allocation6 + $0x48] ss:$16 sps:$4 sm:$0xff]   ;;  %v1597_v56 = vld [vmem:[#allocation6 + $0x6c] ss:$16 sps:$4 sm:$0xff]  }
  0x79   :  { %v1624_v12 = vld [vmem:[#allocation6 + $0x18c] ss:$16 sps:$4 sm:$0xff]  }
  0x7a   :  { %246 = vmatmul.mubr.bf16.vlgmr.msra.gmra.mrb[0].mxu0 %v1536_v18  ;;  %1215 = vmatpush1.bf16.msra.mxu1 %v1642_v57  ;;  %v1669_v18 = vld [vmem:[%s2229_s5 + $0xb0] ss:$8 sps:$4 sm:$0xff]  }
  0x7b   :  { %255 = vmatprep.mubr.bf16.mxu0 %v1871_v0  ;;  %685 = vmatpush1.bf16.msra.mxu0 %v1538_v19  ;;  %v1652_v0 = vld [vmem:[%s2229_s5 + $0x64] ss:$8 sps:$4 sm:$0xff]  }
  0x7c   :  { %686 = vmatprep.subr.bf16.mxu0 %v1543_v20  ;;  %1216 = vmatprep.subr.bf16.mxu1 %v1643_v58  ;;  %v1670_v19 = vld [vmem:[%s2229_s5 + $0xc4] ss:$8 sps:$4 sm:$0xff]  }
  0x7d   :  { %v1595_v57 = vld [vmem:[#allocation6 + $0x68] ss:$16 sps:$4 sm:$0xff]   ;;  %v1600_v58 = vld [vmem:[#allocation6 + $0x8c] ss:$16 sps:$4 sm:$0xff]  }
  0x7e   :  { %1217 = vmatpush1.bf16.msra.mxu1 %v1645_v59  ;;  %v1598_v59 = vld [vmem:[#allocation6 + $0x88] ss:$16 sps:$4 sm:$0xff]  }
  0x7f   :  { %687 = vmatpush1.bf16.msra.mxu0 %v1541_v21  ;;  %1218 = vmatprep.subr.bf16.mxu1 %v1646_v60  ;;  %v1603_v60 = vld [vmem:[#allocation6 + $0xac] ss:$16 sps:$4 sm:$0xff]  }
  0x80   :  { %688 = vmatprep.subr.bf16.mxu0 %v1546_v22 }
  0x82   :  { %256 = vmatmul.mubr.bf16.gmra.mrb[4].mxu0 %v1537_v23  ;;  %1219 = vmatpush1.bf16.msra.mxu1 %v1648_v61  ;;  %v1601_v61 = vld [vmem:[#allocation6 + $0xa8] ss:$16 sps:$4 sm:$0xff]  }
  0x83   :  { %689 = vmatpush1.bf16.msra.mxu0 %v1544_v24  ;;  %1220 = vmatprep.subr.bf16.mxu1 %v1649_v62  ;;  %v1606_v62 = vld [vmem:[#allocation6 + $0xcc] ss:$16 sps:$4 sm:$0xff]  }
  0x84   :  { %690 = vmatprep.subr.bf16.mxu0 %v1549_v25  ;;  %v1672_v25 = vld [vmem:[%s2229_s5 + $0xc0] ss:$8 sps:$4 sm:$0xff]  }
  0x86   :  { %1221 = vmatpush1.bf16.msra.mxu1 %v1651_v63  ;;  %v1604_v63 = vld [vmem:[#allocation6 + $0xc8] ss:$16 sps:$4 sm:$0xff]  }
  0x87   :  { %691 = vmatpush1.bf16.msra.mxu0 %v1547_v26  ;;  %1222 = vmatprep.subr.bf16.mxu1 %v1652_v0  ;;  %v1609_v0 = vld [vmem:[#allocation6 + $0xec] ss:$16 sps:$4 sm:$0xff]  }
  0x88   :  { %692 = vmatprep.subr.bf16.mxu0 %v1552_v27 }
  0x8a   :  { %1223 = vmatpush1.bf16.msra.mxu1 %v1654_v1  ;;  %v1607_v1 = vld [vmem:[#allocation6 + $0xe8] ss:$16 sps:$4 sm:$0xff]  }
  0x8b   :  { %693 = vmatpush1.bf16.msra.mxu0 %v1550_v28  ;;  %1224 = vmatprep.subr.bf16.mxu1 %v1655_v2  ;;  %v1673_v28 = vld [vmem:[%s2229_s5 + $0xd4] ss:$8 sps:$4 sm:$0xff]  }
  0x8c   :  { %694 = vmatprep.subr.bf16.mxu0 %v1555_v29  ;;  %v1612_v2 = vld [vmem:[#allocation6 + $0x10c] ss:$16 sps:$4 sm:$0xff]  }
  0x8e   :  { %1225 = vmatpush1.bf16.msra.mxu1 %v1657_v3  ;;  %v1610_v3 = vld [vmem:[#allocation6 + $0x108] ss:$16 sps:$4 sm:$0xff]  }
  0x8f   :  { %695 = vmatpush1.bf16.msra.mxu0 %v1553_v30  ;;  %1226 = vmatprep.subr.bf16.mxu1 %v1658_v4  ;;  %v1615_v4 = vld [vmem:[#allocation6 + $0x12c] ss:$16 sps:$4 sm:$0xff]  }
  0x90   :  { %696 = vmatprep.subr.bf16.mxu0 %v1558_v31 }
  0x92   :  { %1227 = vmatpush1.bf16.msra.mxu1 %v1660_v6  ;;  %v1618_v6 = vld [vmem:[#allocation6 + $0x14c] ss:$16 sps:$4 sm:$0xff]  }
  0x93   :  { %697 = vmatpush1.bf16.msra.mxu0 %v1556_v32  ;;  %1228 = vmatprep.subr.bf16.mxu1 %v1661_v7  ;;  %v1616_v7 = vld [vmem:[#allocation6 + $0x148] ss:$16 sps:$4 sm:$0xff]  }
  0x94   :  { %698 = vmatprep.subr.bf16.mxu0 %v1561_v33 }
  0x96   :  { %1229 = vmatpush1.bf16.msra.mxu1 %v1663_v9  ;;  %v1621_v9 = vld [vmem:[#allocation6 + $0x16c] ss:$16 sps:$4 sm:$0xff]  }
  0x97   :  { %699 = vmatpush1.bf16.msra.mxu0 %v1559_v34  ;;  %1230 = vmatprep.subr.bf16.mxu1 %v1664_v10  ;;  %v1675_v34 = vld [vmem:[%s2229_s5 + $0xd0] ss:$8 sps:$4 sm:$0xff]  }
  0x98   :  { %700 = vmatprep.subr.bf16.mxu0 %v1564_v35  ;;  %v1619_v10 = vld [vmem:[#allocation6 + $0x168] ss:$16 sps:$4 sm:$0xff]  }
  0x9a   :  { %1231 = vmatpush1.bf16.msra.mxu1 %v1666_v14  ;;  %v1622_v14 = vld [vmem:[#allocation6 + $0x188] ss:$16 sps:$4 sm:$0xff]  }
  0x9b   :  { %701 = vmatpush1.bf16.msra.mxu0 %v1562_v36  ;;  %1232 = vmatprep.subr.bf16.mxu1 %v1667_v15  ;;  %v1627_v15 = vld [vmem:[#allocation6 + $0x1ac] ss:$16 sps:$4 sm:$0xff]  }
  0x9c   :  { %702 = vmatprep.subr.bf16.mxu0 %v1567_v37 }
  0x9e   :  { %1233 = vmatpush1.bf16.msra.mxu1 %v1669_v18  ;;  %v1628_v18 = vld [vmem:[#allocation6 + $0x1c8] ss:$16 sps:$4 sm:$0xff]  }
  0x9f   :  { %703 = vmatpush1.bf16.msra.mxu0 %v1565_v38  ;;  %1234 = vmatprep.subr.bf16.mxu1 %v1670_v19  ;;  %v1586_v38 = vld [vmem:[#allocation6 + $0x8] ss:$16 sps:$4 sm:$0xff]   ;;  %v1633_v19 = vld [vmem:[#allocation6 + $0x1ec] ss:$16 sps:$4 sm:$0xff]  }
  0xa0   :  { %704 = vmatprep.subr.bf16.mxu0 %v1570_v39 }
  0xa2   :  { %1235 = vmatpush1.bf16.msra.mxu1 %v1672_v25  ;;  %v1684_v25 = vld [vmem:[%s2229_s5 + $0x104] ss:$8 sps:$4 sm:$0xff]  }
  0xa3   :  { %705 = vmatpush1.bf16.msra.mxu0 %v1568_v40  ;;  %1236 = vmatprep.subr.bf16.mxu1 %v1673_v28 }
  0xa4   :  { %706 = vmatprep.subr.bf16.mxu0 %v1573_v41  ;;  %v1591_v41 = vld [vmem:[#allocation6 + $0x2c] ss:$16 sps:$4 sm:$0xff]  }
  0xa6   :  { %1237 = vmatpush1.bf16.msra.mxu1 %v1675_v34 }
  0xa7   :  { %707 = vmatpush1.bf16.msra.mxu0 %v1571_v42 }
  0xa8   :  { %708 = vmatprep.subr.bf16.mxu0 %v1576_v43 }
  0xab   :  { %709 = vmatpush1.bf16.msra.mxu0 %v1574_v44 }
  0xac   :  { %710 = vmatprep.subr.bf16.mxu0 %v1579_v45 }
  0xaf   :  { %711 = vmatpush1.bf16.msra.mxu0 %v1577_v46 }
  0xb0   :  { %712 = vmatprep.subr.bf16.mxu0 %v1582_v47 }
  0xb3   :  { %713 = vmatpush1.bf16.msra.mxu0 %v1580_v48 }
  0xb4   :  { %714 = vmatprep.subr.bf16.mxu0 %v1585_v49  ;;  %v1589_v49 = vld [vmem:[#allocation6 + $0x28] ss:$16 sps:$4 sm:$0xff]  }
  0xb7   :  { %715 = vmatpush1.bf16.msra.mxu0 %v1583_v50 }
  0xb8   :  { %737 = vmatprep.subr.bf16.mxu0 %v1588_v51  ;;  %v1594_v51 = vld [vmem:[#allocation6 + $0x4c] ss:$16 sps:$4 sm:$0xff]  }
 0x14d   :  { %v247_v20 = vpop.f32.mrb[0].mxu0 }
 0x14e   :  { %v248_v21 = vadd.f32 %v247_v20, %v114_v16  ;;  %v249_v22 = vpop.f32.mrb[1].mxu0  ;;  %v1631_v20 = vld [vmem:[#allocation6 + $0x1e8] ss:$16 sps:$4 sm:$0xff]  }
 0x14f   :  { %v250_v23 = vadd.f32 %v249_v22, %v118_v17  ;;  %v251_v24 = vpop.f32.mrb[2].mxu0  ;;  %v1678_v22 = vld [vmem:[%s2229_s5 + $0xe0] ss:$8 sps:$4 sm:$0xff]  }
 0x150   :  { %v252_v26 = vadd.f32 %v251_v24, %v114_v16  ;;  %v253_v27 = vpop.f32.mrb[3].mxu0  ;;  %v266_v30 = vmax.f32 %v248_v21, 0.0  ;;  %v1676_v21 = vld [vmem:[%s2229_s5 + $0xe4] ss:$8 sps:$4 sm:$0xff]   ;;  %v1681_v24 = vld [vmem:[%s2229_s5 + $0xf0] ss:$8 sps:$4 sm:$0xff]  }
 0x151   :  { %v254_v29 = vadd.f32 %v253_v27, %v118_v17  ;;  %v267_v32 = vmax.f32 %v250_v23, 0.0  ;;  %1238 = vmatprep.subr.bf16.mxu1 %v1676_v21  ;;  %v1679_v23 = vld [vmem:[%s2229_s5 + $0xf4] ss:$8 sps:$4 sm:$0xff]  }
 0x152   :  { %v268_v31 = vmax.f32 %v252_v26, 0.0  ;;  %1239 = vmatpush1.bf16.msra.mxu1 %v1678_v22  ;;  %v2091_v26 = vld [vmem:[#allocation7] sm:$0xf]  ;;  %v1723_v21 = vld [vmem:[%s2229_s5 + $0x1d4] ss:$8 sps:$4 sm:$0xff]   ;;  %v354_v22 = vsub.s32 2, %v2035_v8 }
 0x153   :  { %v269_v33 = vmax.f32 %v254_v29, 0.0  ;;  %1240 = vmatprep.subr.bf16.mxu1 %v1679_v23  ;;  %v347_v27 = vrot.slane %v2091_v26, %v2044_v11  ;;  %v351_v28 = vrot.slane %v2091_v26, %v2047_v13  ;;  %v358_v23 = vsub.s32 3, %v2035_v8  ;;  %v1724_v8 = vld [vmem:[%s2229_s5 + $0x1e0] ss:$8 sps:$4 sm:$0xff]  }
 0x154   :  { %v2072_v35 = vpack.c.bf16 %v268_v31, %v266_v30 }
 0x155   :  { %v275_v36 = vpack.c.bf16 %v269_v33, %v267_v32  ;;  %v257_v37 = vpop.f32.mrb[4].mxu0 }
 0x156   :  { %v258_v39 = vadd.f32 %v257_v37, %v114_v16  ;;  %v259_v40 = vpop.f32.mrb[5].mxu0  ;;  %1241 = vmatpush1.bf16.msra.mxu1 %v1681_v24  ;;  %v1721_v24 = vld [vmem:[%s2229_s5 + $0x1d0] ss:$8 sps:$4 sm:$0xff]  }
 0x157   :  { %v260_v42 = vadd.f32 %v259_v40, %v118_v17  ;;  %v261_v43 = vpop.f32.mrb[6].mxu0  ;;  %716 = vmatprep.mubr.bf16.mxu0 %v275_v36  ;;  %1263 = vmatprep.subr.bf16.mxu1 %v1684_v25  ;;  %v355_v25 = vrot.slane %v2091_v26, %v354_v22 }
 0x158   :  { %v270_v44 = vmax.f32 %v258_v39, 0.0  ;;  %v262_v45 = vadd.f32 %v261_v43, %v114_v16  ;;  %v263_v46 = vpop.f32.mrb[7].mxu0  ;;  %717 = vmatmul.mubr.bf16.vlgmr.msra.gmra.mrb[8].mxu0 %v2072_v35  ;;  %v1625_v16 = vld [vmem:[#allocation6 + $0x1a8] ss:$16 sps:$4 sm:$0xff]  }
 0x159   :  { %v271_v47 = vmax.f32 %v260_v42, 0.0  ;;  %v264_v48 = vadd.f32 %v263_v46, %v118_v17  ;;  %738 = vmatpush1.bf16.msra.mxu0 %v1586_v38  ;;  %v1630_v17 = vld [vmem:[#allocation6 + $0x1cc] ss:$16 sps:$4 sm:$0xff]  }
 0x15a   :  { %v272_v50 = vmax.f32 %v262_v45, 0.0  ;;  %739 = vmatprep.subr.bf16.mxu0 %v1591_v41  ;;  %v1682_v43 = vld [vmem:[%s2229_s5 + $0x100] ss:$8 sps:$4 sm:$0xff]   ;;  %v1687_v45 = vld [vmem:[%s2229_s5 + $0x114] ss:$8 sps:$4 sm:$0xff]  }
 0x15b   :  { %v273_v52 = vmax.f32 %v264_v48, 0.0 }
 0x15c   :  { %v276_v53 = vpack.c.bf16 %v272_v50, %v270_v44 }
 0x15d   :  { %v277_v54 = vpack.c.bf16 %v273_v52, %v271_v47  ;;  %740 = vmatpush1.bf16.msra.mxu0 %v1589_v49 }
 0x15e   :  { %741 = vmatprep.subr.bf16.mxu0 %v1594_v51 }
 0x15f   :  { %726 = vmatprep.mubr.bf16.mxu0 %v277_v54 }
 0x160   :  { %727 = vmatmul.mubr.bf16.gmra.mrb[12].mxu0 %v276_v53 }
 0x161   :  { %742 = vmatpush1.bf16.msra.mxu0 %v1592_v55  ;;  %769 = vmatprep.mubr.bf16.mxu0 %v275_v36 }
 0x162   :  { %743 = vmatprep.subr.bf16.mxu0 %v1597_v56  ;;  %v1690_v56 = vld [vmem:[%s2229_s5 + $0x124] ss:$8 sps:$4 sm:$0xff]  }
 0x165   :  { %744 = vmatpush1.bf16.msra.mxu0 %v1595_v57 }
 0x166   :  { %745 = vmatprep.subr.bf16.mxu0 %v1600_v58 }
 0x169   :  { %746 = vmatpush1.bf16.msra.mxu0 %v1598_v59 }
 0x16a   :  { %747 = vmatprep.subr.bf16.mxu0 %v1603_v60  ;;  %v1688_v60 = vld [vmem:[%s2229_s5 + $0x120] ss:$8 sps:$4 sm:$0xff]  }
 0x16d   :  { %748 = vmatpush1.bf16.msra.mxu0 %v1601_v61 }
 0x16e   :  { %749 = vmatprep.subr.bf16.mxu0 %v1606_v62  ;;  %v1693_v62 = vld [vmem:[%s2229_s5 + $0x134] ss:$8 sps:$4 sm:$0xff]  }
 0x171   :  { %750 = vmatpush1.bf16.msra.mxu0 %v1604_v63  ;;  %v1691_v63 = vld [vmem:[%s2229_s5 + $0x130] ss:$8 sps:$4 sm:$0xff]  }
 0x172   :  { %751 = vmatprep.subr.bf16.mxu0 %v1609_v0  ;;  %v1696_v0 = vld [vmem:[%s2229_s5 + $0x144] ss:$8 sps:$4 sm:$0xff]  }
 0x175   :  { %752 = vmatpush1.bf16.msra.mxu0 %v1607_v1  ;;  %v1694_v1 = vld [vmem:[%s2229_s5 + $0x140] ss:$8 sps:$4 sm:$0xff]  }
 0x176   :  { %753 = vmatprep.subr.bf16.mxu0 %v1612_v2  ;;  %v1699_v2 = vld [vmem:[%s2229_s5 + $0x154] ss:$8 sps:$4 sm:$0xff]  }
 0x179   :  { %754 = vmatpush1.bf16.msra.mxu0 %v1610_v3  ;;  %v1697_v3 = vld [vmem:[%s2229_s5 + $0x150] ss:$8 sps:$4 sm:$0xff]  }
 0x17a   :  { %755 = vmatprep.subr.bf16.mxu0 %v1615_v4  ;;  %v1702_v4 = vld [vmem:[%s2229_s5 + $0x164] ss:$8 sps:$4 sm:$0xff]  }
 0x17d   :  { %756 = vmatpush1.bf16.msra.mxu0 %v1613_v5  ;;  %v1700_v5 = vld [vmem:[%s2229_s5 + $0x160] ss:$8 sps:$4 sm:$0xff]  }
 0x17e   :  { %757 = vmatprep.subr.bf16.mxu0 %v1618_v6  ;;  %v1705_v6 = vld [vmem:[%s2229_s5 + $0x174] ss:$8 sps:$4 sm:$0xff]  }
 0x181   :  { %758 = vmatpush1.bf16.msra.mxu0 %v1616_v7  ;;  %v1703_v7 = vld [vmem:[%s2229_s5 + $0x170] ss:$8 sps:$4 sm:$0xff]  }
 0x182   :  { %759 = vmatprep.subr.bf16.mxu0 %v1621_v9  ;;  %v1708_v9 = vld [vmem:[%s2229_s5 + $0x184] ss:$8 sps:$4 sm:$0xff]  }
 0x185   :  { %760 = vmatpush1.bf16.msra.mxu0 %v1619_v10  ;;  %v1706_v10 = vld [vmem:[%s2229_s5 + $0x180] ss:$8 sps:$4 sm:$0xff]  }
 0x186   :  { %761 = vmatprep.subr.bf16.mxu0 %v1624_v12  ;;  %v1711_v12 = vld [vmem:[%s2229_s5 + $0x194] ss:$8 sps:$4 sm:$0xff]  }
 0x189   :  { %762 = vmatpush1.bf16.msra.mxu0 %v1622_v14  ;;  %v1709_v14 = vld [vmem:[%s2229_s5 + $0x190] ss:$8 sps:$4 sm:$0xff]  }
 0x18a   :  { %763 = vmatprep.subr.bf16.mxu0 %v1627_v15  ;;  %v1714_v15 = vld [vmem:[%s2229_s5 + $0x1a4] ss:$8 sps:$4 sm:$0xff]  }
 0x18d   :  { %764 = vmatpush1.bf16.msra.mxu0 %v1625_v16  ;;  %v1712_v16 = vld [vmem:[%s2229_s5 + $0x1a0] ss:$8 sps:$4 sm:$0xff]  }
 0x18e   :  { %765 = vmatprep.subr.bf16.mxu0 %v1630_v17  ;;  %v1717_v17 = vld [vmem:[%s2229_s5 + $0x1b4] ss:$8 sps:$4 sm:$0xff]  }
 0x191   :  { %766 = vmatpush1.bf16.msra.mxu0 %v1628_v18  ;;  %v1715_v18 = vld [vmem:[%s2229_s5 + $0x1b0] ss:$8 sps:$4 sm:$0xff]  }
 0x192   :  { %767 = vmatprep.subr.bf16.mxu0 %v1633_v19  ;;  %v1720_v19 = vld [vmem:[%s2229_s5 + $0x1c4] ss:$8 sps:$4 sm:$0xff]  }
 0x195   :  { %768 = vmatpush1.bf16.msra.mxu0 %v1631_v20  ;;  %v1718_v20 = vld [vmem:[%s2229_s5 + $0x1c0] ss:$8 sps:$4 sm:$0xff]  }
 0x198   :  { %770 = vmatmul.mubr.bf16.vlgmr.msra.gmra.mrb[16].mxu0 %v2072_v35 }
 0x199   :  { %779 = vmatprep.mubr.bf16.mxu0 %v277_v54 }
 0x1a0   :  { %780 = vmatmul.mubr.bf16.gmra.mrb[20].mxu0 %v276_v53  ;;  %v1685_v53 = vld [vmem:[%s2229_s5 + $0x110] ss:$8 sps:$4 sm:$0xff]  }
 0x22b   :  { %v718_v29 = vpop.f32.mrb[8].mxu0 }
 0x22c   :  { %v719_v30 = vadd.f32 %v718_v29, %v347_v27  ;;  %v720_v31 = vpop.f32.mrb[9].mxu0 }
 0x22d   :  { %v721_v32 = vadd.f32 %v720_v31, %v351_v28  ;;  %v722_v33 = vpop.f32.mrb[10].mxu0 }
 0x22e   :  { %v723_v34 = vadd.f32 %v722_v33, %v347_v27  ;;  %v724_v35 = vpop.f32.mrb[11].mxu0  ;;  %v790_v37 = vmax.f32 %v719_v30, 0.0 }
 0x22f   :  { %v725_v36 = vadd.f32 %v724_v35, %v351_v28  ;;  %v791_v39 = vmax.f32 %v721_v32, 0.0  ;;  %v1729_v32 = vld [vmem:[%s2229_s5 + $0x1f4] ss:$8 sps:$4 sm:$0xff]  }
 0x230   :  { %v794_v38 = vmax.f32 %v723_v34, 0.0 }
 0x231   :  { %v795_v40 = vmax.f32 %v725_v36, 0.0 }
 0x232   :  { %v806_v41 = vpack.c.bf16 %v794_v38, %v790_v37 }
 0x233   :  { %v807_v42 = vpack.c.bf16 %v795_v40, %v791_v39  ;;  %v728_v44 = vpop.f32.mrb[12].mxu0 }
 0x234   :  { %v729_v46 = vadd.f32 %v728_v44, %v347_v27  ;;  %v730_v47 = vpop.f32.mrb[13].mxu0 }
 0x235   :  { %1242 = vmatprep.mubr.bf16.mxu1 %v807_v42  ;;  %v731_v48 = vadd.f32 %v730_v47, %v351_v28  ;;  %v732_v49 = vpop.f32.mrb[14].mxu0 }
 0x236   :  { %1243 = vmatmul.mubr.bf16.vlgmr.msra.gmra.mrb[0].mxu1 %v806_v41  ;;  %v798_v50 = vmax.f32 %v729_v46, 0.0  ;;  %v733_v51 = vadd.f32 %v732_v49, %v347_v27  ;;  %v734_v52 = vpop.f32.mrb[15].mxu0  ;;  %v1726_v27 = vld [vmem:[%s2229_s5 + $0x1e4] ss:$8 sps:$4 sm:$0xff]  }
 0x237   :  { %1264 = vmatpush1.bf16.msra.mxu1 %v1682_v43  ;;  %v799_v54 = vmax.f32 %v731_v48, 0.0  ;;  %v735_v55 = vadd.f32 %v734_v52, %v351_v28  ;;  %v359_v28 = vrot.slane %v2091_v26, %v358_v23  ;;  %v1727_v26 = vld [vmem:[%s2229_s5 + $0x1f0] ss:$8 sps:$4 sm:$0xff]  }
 0x238   :  { %1265 = vmatprep.subr.bf16.mxu1 %v1687_v45  ;;  %v802_v57 = vmax.f32 %v733_v51, 0.0 }
 0x239   :  { %v803_v58 = vmax.f32 %v735_v55, 0.0 }
 0x23a   :  { %v810_v59 = vpack.c.bf16 %v802_v57, %v798_v50 }
 0x23b   :  { %1266 = vmatpush1.bf16.msra.mxu1 %v1685_v53  ;;  %v811_v61 = vpack.c.bf16 %v803_v58, %v799_v54  ;;  %v878_v58 = vld [vmem:[#allocation9] sm:$0x3] }
 0x23c   :  { %1267 = vmatprep.subr.bf16.mxu1 %v1690_v56 }
 0x23d   :  { %1252 = vmatprep.mubr.bf16.mxu1 %v811_v61 }
 0x23e   :  { %1253 = vmatmul.mubr.bf16.gmra.mrb[4].mxu1 %v810_v59  ;;  %v883_v59 = vrot.slane %v878_v58, %v2044_v11 }
 0x23f   :  { %1268 = vmatpush1.bf16.msra.mxu1 %v1688_v60  ;;  %v887_v60 = vrot.slane %v878_v58, %v2047_v13 }
 0x240   :  { %1269 = vmatprep.subr.bf16.mxu1 %v1693_v62 }
 0x243   :  { %1270 = vmatpush1.bf16.msra.mxu1 %v1691_v63 }
 0x244   :  { %1271 = vmatprep.subr.bf16.mxu1 %v1696_v0 }
 0x247   :  { %1272 = vmatpush1.bf16.msra.mxu1 %v1694_v1 }
 0x248   :  { %1273 = vmatprep.subr.bf16.mxu1 %v1699_v2 }
 0x24b   :  { %1274 = vmatpush1.bf16.msra.mxu1 %v1697_v3 }
 0x24c   :  { %1275 = vmatprep.subr.bf16.mxu1 %v1702_v4 }
 0x24f   :  { %1276 = vmatpush1.bf16.msra.mxu1 %v1700_v5 }
 0x250   :  { %1277 = vmatprep.subr.bf16.mxu1 %v1705_v6 }
 0x253   :  { %1278 = vmatpush1.bf16.msra.mxu1 %v1703_v7 }
 0x254   :  { %1279 = vmatprep.subr.bf16.mxu1 %v1708_v9 }
 0x257   :  { %1280 = vmatpush1.bf16.msra.mxu1 %v1706_v10 }
 0x258   :  { %1281 = vmatprep.subr.bf16.mxu1 %v1711_v12 }
 0x25b   :  { %1282 = vmatpush1.bf16.msra.mxu1 %v1709_v14 }
 0x25c   :  { %1283 = vmatprep.subr.bf16.mxu1 %v1714_v15 }
 0x25f   :  { %1284 = vmatpush1.bf16.msra.mxu1 %v1712_v16 }
 0x260   :  { %1285 = vmatprep.subr.bf16.mxu1 %v1717_v17 }
 0x263   :  { %1286 = vmatpush1.bf16.msra.mxu1 %v1715_v18 }
 0x264   :  { %1287 = vmatprep.subr.bf16.mxu1 %v1720_v19 }
 0x267   :  { %1288 = vmatpush1.bf16.msra.mxu1 %v1718_v20 }
 0x268   :  { %1289 = vmatprep.subr.bf16.mxu1 %v1723_v21 }
 0x26b   :  { %v771_v29 = vpop.f32.mrb[16].mxu0  ;;  %1290 = vmatpush1.bf16.msra.mxu1 %v1721_v24 }
 0x26c   :  { %v772_v30 = vadd.f32 %v771_v29, %v355_v25  ;;  %v773_v31 = vpop.f32.mrb[17].mxu0  ;;  %1291 = vmatprep.subr.bf16.mxu1 %v1726_v27 }
 0x26d   :  { %v774_v33 = vadd.f32 %v773_v31, %v359_v28  ;;  %v775_v34 = vpop.f32.mrb[18].mxu0 }
 0x26e   :  { %v776_v35 = vadd.f32 %v775_v34, %v355_v25  ;;  %v777_v36 = vpop.f32.mrb[19].mxu0  ;;  %v792_v38 = vmax.f32 %v772_v30, 0.0 }
 0x26f   :  { %v778_v37 = vadd.f32 %v777_v36, %v359_v28  ;;  %1292 = vmatpush1.bf16.msra.mxu1 %v1724_v8  ;;  %v793_v40 = vmax.f32 %v774_v33, 0.0 }
 0x270   :  { %v796_v39 = vmax.f32 %v776_v35, 0.0  ;;  %1293 = vmatprep.subr.bf16.mxu1 %v1729_v32 }
 0x271   :  { %v797_v41 = vmax.f32 %v778_v37, 0.0 }
 0x272   :  { %v808_v42 = vpack.c.bf16 %v796_v39, %v792_v38 }
 0x273   :  { %v809_v43 = vpack.c.bf16 %v797_v41, %v793_v40  ;;  %v781_v44 = vpop.f32.mrb[20].mxu0  ;;  %1294 = vmatpush1.bf16.msra.mxu1 %v1727_v26 }
 0x274   :  { %v782_v45 = vadd.f32 %v781_v44, %v355_v25  ;;  %v783_v46 = vpop.f32.mrb[21].mxu0 }
 0x275   :  { %v784_v47 = vadd.f32 %v783_v46, %v359_v28  ;;  %v785_v48 = vpop.f32.mrb[22].mxu0  ;;  %1295 = vmatprep.mubr.bf16.mxu1 %v809_v43 }
 0x276   :  { %v786_v49 = vadd.f32 %v785_v48, %v355_v25  ;;  %v787_v50 = vpop.f32.mrb[23].mxu0  ;;  %1296 = vmatmul.mubr.bf16.vlgmr.msra.gmra.mrb[0].mxu1 %v808_v42  ;;  %v800_v52 = vmax.f32 %v782_v45, 0.0 }
 0x277   :  { %v788_v51 = vadd.f32 %v787_v50, %v359_v28  ;;  %v801_v54 = vmax.f32 %v784_v47, 0.0 }
 0x278   :  { %v804_v53 = vmax.f32 %v786_v49, 0.0 }
 0x279   :  { %v805_v55 = vmax.f32 %v788_v51, 0.0 }
 0x27a   :  { %v812_v56 = vpack.c.bf16 %v804_v53, %v800_v52 }
 0x27b   :  { %v813_v57 = vpack.c.bf16 %v805_v55, %v801_v54 }
 0x27d   :  { %1305 = vmatprep.mubr.bf16.mxu1 %v813_v57 }
 0x27e   :  { %1306 = vmatmul.mubr.bf16.gmra.mrb[4].mxu1 %v812_v56 }
 0x349   :  { %v1297_v61 = vpop.f32.mrb[0].mxu1 }
 0x34a   :  { %v1486_v62 = vadd.f32 %v1297_v61, %v883_v59  ;;  %v1299_v63 = vpop.f32.mrb[1].mxu1 }
 0x34b   :  { %v1487_v0 = vadd.f32 %v1299_v63, %v887_v60  ;;  %v1301_v1 = vpop.f32.mrb[2].mxu1 }
 0x34c   :  { %1730 = vtanh.f32 %v1486_v62  ;;  %v1488_v2 = vadd.f32 %v1301_v1, %v883_v59  ;;  %v1303_v3 = vpop.f32.mrb[3].mxu1 }
 0x34d   :  { %1732 = vtanh.f32 %v1487_v0  ;;  %v1489_v4 = vadd.f32 %v1303_v3, %v887_v60 }
 0x34e   :  { %1734 = vtanh.f32 %v1488_v2 }
 0x34f   :  { %1736 = vtanh.f32 %v1489_v4 }
 0x351   :  { %v1307_v5 = vpop.f32.mrb[4].mxu1 }
 0x352   :  { %v1490_v6 = vadd.f32 %v1307_v5, %v883_v59  ;;  %v1309_v7 = vpop.f32.mrb[5].mxu1 }
 0x353   :  { %v1491_v9 = vadd.f32 %v1309_v7, %v887_v60  ;;  %v1311_v10 = vpop.f32.mrb[6].mxu1 }
 0x354   :  { %1738 = vtanh.f32 %v1490_v6  ;;  %v1492_v11 = vadd.f32 %v1311_v10, %v883_v59  ;;  %v1313_v13 = vpop.f32.mrb[7].mxu1 }
 0x355   :  { %1740 = vtanh.f32 %v1491_v9  ;;  %v1493_v12 = vadd.f32 %v1313_v13, %v887_v60 }
 0x356   :  { %v1731_v14 = vpop.eup %1730  ;;  %1742 = vtanh.f32 %v1492_v11 }
 0x357   :  { %v1733_v15 = vpop.eup %1732  ;;  %1324 = vst [vmem:[%s2231_s7] sm:$0xff] %v1731_v14  ;;  %1744 = vtanh.f32 %v1493_v12 }
 0x358   :  { %v1735_v16 = vpop.eup %1734  ;;  %1326 = vst.msk [vmem:[%s2231_s7 + $0x8] sm:$0xff] %vm1325_vm0, %v1733_v15 }
 0x359   :  { %v1737_v17 = vpop.eup %1736  ;;  %1327 = vst [vmem:[%s2231_s7 + $0x10] sm:$0xff] %v1735_v16 }
 0x35a   :  { %1328 = vst.msk [vmem:[%s2231_s7 + $0x18] sm:$0xff] %vm1325_vm0, %v1737_v17 }
 0x35e   :  { %v1739_v18 = vpop.eup %1738 }
 0x35f   :  { %v1741_v19 = vpop.eup %1740  ;;  %1329 = vst [vmem:[%s2231_s7 + $0x20] sm:$0xff] %v1739_v18 }
 0x360   :  { %v1743_v20 = vpop.eup %1742  ;;  %1330 = vst.msk [vmem:[%s2231_s7 + $0x28] sm:$0xff] %vm1325_vm0, %v1741_v19 }
 0x361   :  { %v1745_v21 = vpop.eup %1744  ;;  %1331 = vst [vmem:[%s2231_s7 + $0x30] sm:$0xff] %v1743_v20 }
 0x362   :  { %1332 = vst.msk [vmem:[%s2231_s7 + $0x38] sm:$0xff] %vm1325_vm0, %v1745_v21 }
 0x363   :  { %1337 = vsyncpa [#allocation3], 1 }
 0x364   :  { %1338 = vsyncpa [#allocation5], 1 }
 0x365   :  { %1339 = vsyncpa [#allocation8], 1 }

</bundles_post_ra>
